<compile_context>
chip_gen: v5e
topology: v5e:2x2
jax: 0.10.0
libtpu: 0.0.40
codegen_flags: <defaults>
</compile_context>

<pallas_src>
import functools
import math

import jax
import jax.numpy as jnp
from jax.experimental import pallas as pl
from jax.experimental.pallas import tpu as pltpu


def set_transformer_kernel(x_ref, wqk_ref, c_ref, wv_ref, bv_ref,
                           agg_ref, wc_ref, bc_ref, out_ref, *, S):
    """One grid step = Tb sets (x rows are the Tb*S flattened set elements).

    x_ref   : (Tb*S, E)   input rows (bf16 or f32)
    wqk_ref : (E, HL)     folded q/Wk score projection (HL = heads * n_inducing_points)
    c_ref   : (1, HL)     folded score bias (f32)
    wv_ref  : (E, E)      Wv^T
    bv_ref  : (1, E)      value bias (f32)
    agg_ref : (HL, E)     head-average / feature-broadcast matrix (1/L on head blocks)
    wc_ref  : (E, Np)     (Wfc @ Wo)^T, zero-padded to Np = multiple of 128 lanes
    bc_ref  : (1, Np)     Wfc @ bo + bfc, zero-padded
    out_ref : (Tb, Np)    lane-dense output slab
    """
    TbS, E = x_ref.shape
    Tb = TbS // S
    HL = wqk_ref.shape[1]

    xf = x_ref[...]

    # Two lane-aligned MXU matmuls (scores / values) with f32 accumulation.
    scores = jnp.dot(xf, wqk_ref[...], preferred_element_type=jnp.float32) + c_ref[...]
    v = jnp.dot(xf, wv_ref[...], preferred_element_type=jnp.float32) + bv_ref[...]

    # One softmax over the key axis S for all (head, inducing-point) columns at once.
    # (Tb*S, HL) -> (Tb, S, HL) is a free re-tiling when S % 8 == 0 (relayout otherwise).
    s3 = scores.reshape(Tb, S, HL)
    m = jnp.max(s3, axis=1, keepdims=True)
    p = jnp.exp(s3 - m)
    denom = jnp.sum(p, axis=1, keepdims=True)
    p = p * pl.reciprocal(denom, approx=True)

    # Head-averaged attention weights broadcast to the E feature lanes via a tiny matmul
    # (replaces head-concat / lane reshuffles), then weight the values and pool over S.
    pbar = jnp.dot(p.reshape(TbS, HL), agg_ref[...], preferred_element_type=jnp.float32)
    pooled = jnp.sum((pbar * v).reshape(Tb, S, E), axis=1)           # (Tb, E)

    # Folded (mean over L) -> out_proj -> fc_out; unmasked 128-lane-wide store.
    out_ref[...] = (jnp.dot(pooled, wc_ref[...], preferred_element_type=jnp.float32)
                    + bc_ref[...])


def _fold_params(params, heads, x_dtype):
    """Fold the SetTransformer parameters into the kernel's fused operands (exact)."""
    ip = params["inducing_points"].astype(jnp.float32)        # (L, E)
    L, E = ip.shape
    assert E % heads == 0, "n_in must be divisible by heads"
    dh = E // heads
    HL = heads * L
    n_out = params["fc_w"].shape[0]

    wq = params["in_proj_w"][:E].astype(jnp.float32)
    wk = params["in_proj_w"][E:2 * E].astype(jnp.float32)
    wv = params["in_proj_w"][2 * E:].astype(jnp.float32)
    bq = params["in_proj_b"][:E].astype(jnp.float32)
    bk = params["in_proj_b"][E:2 * E].astype(jnp.float32)
    bv = params["in_proj_b"][2 * E:].astype(jnp.float32)

    # q depends only on parameters -> precompute it and fold it into Wk / bk.
    q = (ip @ wq.T + bq) * (1.0 / math.sqrt(dh))              # (L, E), already scaled
    q_h = q.reshape(L, heads, dh)                             # q[l, h, d]
    wk_h = wk.reshape(heads, dh, E)                           # Wk[h*dh + d, e]
    bk_h = bk.reshape(heads, dh)

    # scores[b, s, h*L + l] = x[b, s, :] @ w_qk[:, h*L + l] + c[h*L + l]
    w_qk = jnp.einsum("lhd,hde->ehl", q_h, wk_h).reshape(E, HL)
    c = jnp.einsum("lhd,hd->hl", q_h, bk_h).reshape(1, HL)

    # agg[h*L + l, e] = 1/L if e // dh == h else 0
    head_of_col = jnp.arange(HL) // L
    head_of_feat = jnp.arange(E) // dh
    agg = (head_of_col[:, None] == head_of_feat[None, :]).astype(jnp.float32) / L

    # mean-over-L / out_proj / fc_out are linear -> fold:
    #   y = pooled @ (Wfc @ Wo)^T + (Wfc @ bo + bfc)
    fc_w = params["fc_w"].astype(jnp.float32)
    w_comb_t = (fc_w @ params["out_proj_w"].astype(jnp.float32)).T        # (E, n_out)
    b_comb = (fc_w @ params["out_proj_b"].astype(jnp.float32)
              + params["fc_b"].astype(jnp.float32)).reshape(1, n_out)

    # Zero-pad the final projection to a 128-lane multiple so the kernel output store is
    # unmasked / lane-dense (largest single layout lever); padded columns are sliced off.
    n_pad = max(128, pl.cdiv(n_out, 128) * 128)
    w_comb_t = jnp.pad(w_comb_t, ((0, 0), (0, n_pad - n_out)))
    b_comb = jnp.pad(b_comb, ((0, 0), (0, n_pad - n_out)))

    # Only the MXU operands that multiply x get cast down; biases / softmax math stay f32.
    return (w_qk.astype(x_dtype), c, wv.T.astype(x_dtype), bv.reshape(1, E),
            agg, w_comb_t, b_comb, n_out, n_pad)


def set_transformer_forward(x, params, heads, *, block_b=512,
                            x_dtype=jnp.bfloat16,
                            vmem_limit_bytes=32 * 1024 * 1024):
    """x: (S, E) single set (matches the PyTorch module) or (B, S, E) batch of sets.

    block_b = sets per grid step (per-generation guidance):
      v5e: <= ~512 (16 MiB default scoped VMEM; elementwise math is already kept f32);
      v6e: 1024-2048, raising vmem_limit_bytes accordingly;
      v7x: <= ~1024 and keep the grid length >= 2 so the "parallel" batch axis shards
           across both TensorCores.
    Pick block_b dividing B to avoid the tail-padding copy.
    """
    single = x.ndim == 2
    xb = x[None] if single else x
    B, S, E = xb.shape

    (w_qk, c, wv_t, bv, agg, w_c, b_c, n_out, n_pad) = _fold_params(params, heads, x_dtype)

    tb = max(1, min(block_b, B))
    if tb < B:
        tb = ((tb + 7) // 8) * 8          # sublane-align the batch tile for multi-block grids
        if tb >= B:
            tb = B
    n_blocks = pl.cdiv(B, tb)
    b_pad = n_blocks * tb

    xf = xb.reshape(B * S, E).astype(x_dtype)
    if b_pad != B:
        # Tail-only zero pad (costs one extra copy of x); avoided when block_b divides B.
        xf = jnp.pad(xf, ((0, (b_pad - B) * S), (0, 0)))

    kernel = functools.partial(set_transformer_kernel, S=S)

    out = pl.pallas_call(
        kernel,
        out_shape=jax.ShapeDtypeStruct((b_pad, n_pad), jnp.float32),
        grid=(n_blocks,),
        in_specs=[
            pl.BlockSpec((tb * S, E), lambda b: (b, 0)),     # streamed input blocks
            # weights/biases: constant index_map -> VMEM-resident, never re-DMA'd
            # (tiny operands, so no pipeline_mode override needed for VMEM headroom).
            pl.BlockSpec(w_qk.shape, lambda b: (0, 0)),
            pl.BlockSpec(c.shape, lambda b: (0, 0)),
            pl.BlockSpec(wv_t.shape, lambda b: (0, 0)),
            pl.BlockSpec(bv.shape, lambda b: (0, 0)),
            pl.BlockSpec(agg.shape, lambda b: (0, 0)),
            pl.BlockSpec(w_c.shape, lambda b: (0, 0)),
            pl.BlockSpec(b_c.shape, lambda b: (0, 0)),
        ],
        out_specs=pl.BlockSpec((tb, n_pad), lambda b: (b, 0)),
        compiler_params=pltpu.CompilerParams(
            dimension_semantics=("parallel",),
            vmem_limit_bytes=vmem_limit_bytes),
    )(xf, w_qk, c, wv_t, bv, agg, w_c, b_c)

    out = out[:B, :n_out]
    return out[0] if single else out


def _reference(x, params, heads):
    """Pure-JAX reference mirroring torch.nn.MultiheadAttention (unbatched) + mean + fc."""
    ip = params["inducing_points"]
    L, E = ip.shape
    S = x.shape[0]
    dh = E // heads
    wq, wk, wv = (params["in_proj_w"][i * E:(i + 1) * E] for i in range(3))
    bq, bk, bv = (params["in_proj_b"][i * E:(i + 1) * E] for i in range(3))
    q = (ip @ wq.T + bq) / math.sqrt(dh)
    k = x @ wk.T + bk
    v = x @ wv.T + bv
    qh = q.reshape(L, heads, dh).transpose(1, 0, 2)
    kh = k.reshape(S, heads, dh).transpose(1, 0, 2)
    vh = v.reshape(S, heads, dh).transpose(1, 0, 2)
    s = jnp.einsum("hld,hsd->hls", qh, kh)
    p = jax.nn.softmax(s, axis=-1)
    o = jnp.einsum("hls,hsd->hld", p, vh).transpose(1, 0, 2).reshape(L, E)
    o = o @ params["out_proj_w"].T + params["out_proj_b"]
    pooled = jnp.mean(o, axis=0)
    return pooled @ params["fc_w"].T + params["fc_b"]


if __name__ == "__main__":
    # module hyper-params (small demo shapes)
    n_in, n_out, heads, n_inducing_points = 32, 16, 4, 8
    S = 16   # set size (sequence length of x)
    B = 64   # batch of sets; block_b=16 -> grid of 4 "parallel" steps

    key = jax.random.PRNGKey(0)
    ks = jax.random.split(key, 9)

    x_batch = jax.random.normal(ks[0], (B, S, n_in), dtype=jnp.float32)

    params = {
        "inducing_points": jax.random.normal(ks[1], (n_inducing_points, n_in), jnp.float32),
        "in_proj_w":  0.1 * jax.random.normal(ks[2], (3 * n_in, n_in), jnp.float32),
        "in_proj_b":  0.1 * jax.random.normal(ks[3], (3 * n_in,), jnp.float32),
        "out_proj_w": 0.1 * jax.random.normal(ks[4], (n_in, n_in), jnp.float32),
        "out_proj_b": 0.1 * jax.random.normal(ks[5], (n_in,), jnp.float32),
        "fc_w":       0.1 * jax.random.normal(ks[6], (n_out, n_in), jnp.float32),
        "fc_b":       0.1 * jax.random.normal(ks[7], (n_out,), jnp.float32),
    }

    y_ref = jax.vmap(lambda xs: _reference(xs, params, heads))(x_batch)

    # 1) batched bf16-input path (default): one kernel launch, grid of 4 parallel blocks.
    y_bf16 = set_transformer_forward(x_batch, params, heads, block_b=16)
    jax.block_until_ready(y_bf16)
    assert y_bf16.shape == (B, n_out)
    # bf16 MXU operands + approx reciprocal -> loosened tolerance (per perf review).
    assert jnp.allclose(y_bf16, y_ref, atol=3e-2, rtol=3e-2), "bf16 batched mismatch"

    # 2) f32-input path: tight tolerance (only f32 reordering + approx EUP reciprocal).
    y_f32 = set_transformer_forward(x_batch, params, heads, block_b=16,
                                    x_dtype=jnp.float32)
    jax.block_until_ready(y_f32)
    assert jnp.allclose(y_f32, y_ref, atol=5e-3, rtol=5e-3), "f32 batched mismatch"

    # 3) non-dividing batch (exercises the tail-padding path), B=20 with block_b=8.
    y_tail = set_transformer_forward(x_batch[:20], params, heads, block_b=8)
    jax.block_until_ready(y_tail)
    assert y_tail.shape == (20, n_out)
    assert jnp.allclose(y_tail, y_ref[:20], atol=3e-2, rtol=3e-2), "tail-batch mismatch"

    # 4) single-set path: matches the original PyTorch module signature (S, E) -> (n_out,)
    y1 = set_transformer_forward(x_batch[0], params, heads)
    jax.block_until_ready(y1)
    assert y1.shape == (n_out,)
    assert jnp.allclose(y1, y_ref[0], atol=3e-2, rtol=3e-2), "single-set mismatch"

    print("KERNEL_OK")
</pallas_src>

<mosaic_0001>
module attributes {stable_mosaic.version = 11 : i64} {
  func.func @set_transformer_kernel(%arg0: i32, %arg1: memref<256x32xbf16, #tpu.memory_space<vmem>>, %arg2: memref<32x32xbf16, #tpu.memory_space<vmem>>, %arg3: memref<1x32xf32, #tpu.memory_space<vmem>>, %arg4: memref<32x32xbf16, #tpu.memory_space<vmem>>, %arg5: memref<1x32xf32, #tpu.memory_space<vmem>>, %arg6: memref<32x32xf32, #tpu.memory_space<vmem>>, %arg7: memref<32x128xf32, #tpu.memory_space<vmem>>, %arg8: memref<1x128xf32, #tpu.memory_space<vmem>>, %arg9: memref<16x128xf32, #tpu.memory_space<vmem>>) attributes {dimension_semantics = [#tpu.dimension_semantics<parallel>], iteration_bounds = array<i64: 4>, scalar_prefetch = 0 : i64, scratch_operands = 0 : i64, tpu.core_type = #tpu.core_type<tc>, window_params = [{transform_indices = @transform_0, window_bounds = array<i64: 256, 32>}, {pipeline_mode = #tpu.pipeline_mode<synchronous>, transform_indices = @transform_1, window_bounds = array<i64: 32, 32>}, {pipeline_mode = #tpu.pipeline_mode<synchronous>, transform_indices = @transform_2, window_bounds = array<i64: 1, 32>}, {pipeline_mode = #tpu.pipeline_mode<synchronous>, transform_indices = @transform_3, window_bounds = array<i64: 32, 32>}, {pipeline_mode = #tpu.pipeline_mode<synchronous>, transform_indices = @transform_4, window_bounds = array<i64: 1, 32>}, {pipeline_mode = #tpu.pipeline_mode<synchronous>, transform_indices = @transform_5, window_bounds = array<i64: 32, 32>}, {pipeline_mode = #tpu.pipeline_mode<synchronous>, transform_indices = @transform_6, window_bounds = array<i64: 32, 128>}, {pipeline_mode = #tpu.pipeline_mode<synchronous>, transform_indices = @transform_7, window_bounds = array<i64: 1, 128>}, {transform_indices = @transform_8, window_bounds = array<i64: 16, 128>}]} {
    %c0 = arith.constant 0 : index
    %c0_0 = arith.constant 0 : index
    %0 = vector.load %arg1[%c0, %c0_0] : memref<256x32xbf16, #tpu.memory_space<vmem>>, vector<256x32xbf16>
    %c0_1 = arith.constant 0 : index
    %c0_2 = arith.constant 0 : index
    %1 = vector.load %arg2[%c0_1, %c0_2] : memref<32x32xbf16, #tpu.memory_space<vmem>>, vector<32x32xbf16>
    %cst = arith.constant dense<0.000000e+00> : vector<256x32xf32>
    %2 = tpu.matmul %0, %1, %cst {dimension_numbers = #tpu.dot_dimension_numbers<[1], [0], [0], [1], [0, 0, 1, 1], [], []>} : vector<256x32xbf16>, vector<32x32xbf16>, vector<256x32xf32> -> vector<256x32xf32>
    %c0_3 = arith.constant 0 : index
    %c0_4 = arith.constant 0 : index
    %3 = vector.load %arg3[%c0_3, %c0_4] : memref<1x32xf32, #tpu.memory_space<vmem>>, vector<1x32xf32>
    %4 = vector.broadcast %3 : vector<1x32xf32> to vector<256x32xf32>
    %5 = arith.addf %2, %4 : vector<256x32xf32>
    %c0_5 = arith.constant 0 : index
    %c0_6 = arith.constant 0 : index
    %6 = vector.load %arg4[%c0_5, %c0_6] : memref<32x32xbf16, #tpu.memory_space<vmem>>, vector<32x32xbf16>
    %cst_7 = arith.constant dense<0.000000e+00> : vector<256x32xf32>
    %7 = tpu.matmul %0, %6, %cst_7 {dimension_numbers = #tpu.dot_dimension_numbers<[1], [0], [0], [1], [0, 0, 1, 1], [], []>} : vector<256x32xbf16>, vector<32x32xbf16>, vector<256x32xf32> -> vector<256x32xf32>
    %c0_8 = arith.constant 0 : index
    %c0_9 = arith.constant 0 : index
    %8 = vector.load %arg5[%c0_8, %c0_9] : memref<1x32xf32, #tpu.memory_space<vmem>>, vector<1x32xf32>
    %9 = vector.broadcast %8 : vector<1x32xf32> to vector<256x32xf32>
    %10 = arith.addf %7, %9 : vector<256x32xf32>
    %11 = vector.shape_cast %5 : vector<256x32xf32> to vector<16x16x32xf32>
    %cst_10 = arith.constant dense<0xFF800000> : vector<16x32xf32>
    %12 = vector.multi_reduction <maximumf>, %11, %cst_10 [1] : vector<16x16x32xf32> to vector<16x32xf32>
    %13 = vector.shape_cast %12 : vector<16x32xf32> to vector<16x1x32xf32>
    %14 = vector.broadcast %13 : vector<16x1x32xf32> to vector<16x16x32xf32>
    %15 = arith.subf %11, %14 : vector<16x16x32xf32>
    %16 = math.exp %15 : vector<16x16x32xf32>
    %cst_11 = arith.constant dense<0.000000e+00> : vector<16x32xf32>
    %17 = vector.multi_reduction <add>, %16, %cst_11 [1] : vector<16x16x32xf32> to vector<16x32xf32>
    %18 = vector.shape_cast %17 : vector<16x32xf32> to vector<16x1x32xf32>
    %19 = tpu.reciprocal %18 {approx = true} : vector<16x1x32xf32> -> vector<16x1x32xf32>
    %20 = vector.broadcast %19 : vector<16x1x32xf32> to vector<16x16x32xf32>
    %21 = arith.mulf %16, %20 : vector<16x16x32xf32>
    %22 = vector.shape_cast %21 : vector<16x16x32xf32> to vector<256x32xf32>
    %c0_12 = arith.constant 0 : index
    %c0_13 = arith.constant 0 : index
    %23 = vector.load %arg6[%c0_12, %c0_13] : memref<32x32xf32, #tpu.memory_space<vmem>>, vector<32x32xf32>
    %cst_14 = arith.constant dense<0.000000e+00> : vector<256x32xf32>
    %24 = tpu.matmul %22, %23, %cst_14 {dimension_numbers = #tpu.dot_dimension_numbers<[1], [0], [0], [1], [0, 0, 1, 1], [], []>} : vector<256x32xf32>, vector<32x32xf32>, vector<256x32xf32> -> vector<256x32xf32>
    %25 = arith.mulf %24, %10 : vector<256x32xf32>
    %26 = vector.shape_cast %25 : vector<256x32xf32> to vector<16x16x32xf32>
    %cst_15 = arith.constant dense<0.000000e+00> : vector<16x32xf32>
    %27 = vector.multi_reduction <add>, %26, %cst_15 [1] : vector<16x16x32xf32> to vector<16x32xf32>
    %c0_16 = arith.constant 0 : index
    %c0_17 = arith.constant 0 : index
    %28 = vector.load %arg7[%c0_16, %c0_17] : memref<32x128xf32, #tpu.memory_space<vmem>>, vector<32x128xf32>
    %cst_18 = arith.constant dense<0.000000e+00> : vector<16x128xf32>
    %29 = tpu.matmul %27, %28, %cst_18 {dimension_numbers = #tpu.dot_dimension_numbers<[1], [0], [0], [1], [0, 0, 1, 1], [], []>} : vector<16x32xf32>, vector<32x128xf32>, vector<16x128xf32> -> vector<16x128xf32>
    %c0_19 = arith.constant 0 : index
    %c0_20 = arith.constant 0 : index
    %30 = vector.load %arg8[%c0_19, %c0_20] : memref<1x128xf32, #tpu.memory_space<vmem>>, vector<1x128xf32>
    %31 = vector.broadcast %30 : vector<1x128xf32> to vector<16x128xf32>
    %32 = arith.addf %29, %31 : vector<16x128xf32>
    %c0_21 = arith.constant 0 : index
    %c0_22 = arith.constant 0 : index
    %33 = vector.load %arg9[%c0_21, %c0_22] : memref<16x128xf32, #tpu.memory_space<vmem>>, vector<16x128xf32>
    tpu.vector_store %arg9[%c0_21, %c0_22], %32 {strides = array<i32>} : memref<16x128xf32, #tpu.memory_space<vmem>>, vector<16x128xf32>,
    return
  }
  func.func @transform_0(%arg0: i32) -> (i32, i32) {
    %c0_i32 = arith.constant 0 : i32
    %c0_i32_0 = arith.constant 0 : i32
    return %arg0, %c0_i32 : i32, i32
  }
  func.func @transform_1(%arg0: i32) -> (i32, i32) {
    %c0_i32 = arith.constant 0 : i32
    %c0_i32_0 = arith.constant 0 : i32
    %c0_i32_1 = arith.constant 0 : i32
    return %c0_i32, %c0_i32_0 : i32, i32
  }
  func.func @transform_2(%arg0: i32) -> (i32, i32) {
    %c0_i32 = arith.constant 0 : i32
    %c0_i32_0 = arith.constant 0 : i32
    %c0_i32_1 = arith.constant 0 : i32
    return %c0_i32, %c0_i32_0 : i32, i32
  }
  func.func @transform_3(%arg0: i32) -> (i32, i32) {
    %c0_i32 = arith.constant 0 : i32
    %c0_i32_0 = arith.constant 0 : i32
    %c0_i32_1 = arith.constant 0 : i32
    return %c0_i32, %c0_i32_0 : i32, i32
  }
  func.func @transform_4(%arg0: i32) -> (i32, i32) {
    %c0_i32 = arith.constant 0 : i32
    %c0_i32_0 = arith.constant 0 : i32
    %c0_i32_1 = arith.constant 0 : i32
    return %c0_i32, %c0_i32_0 : i32, i32
  }
  func.func @transform_5(%arg0: i32) -> (i32, i32) {
    %c0_i32 = arith.constant 0 : i32
    %c0_i32_0 = arith.constant 0 : i32
    %c0_i32_1 = arith.constant 0 : i32
    return %c0_i32, %c0_i32_0 : i32, i32
  }
  func.func @transform_6(%arg0: i32) -> (i32, i32) {
    %c0_i32 = arith.constant 0 : i32
    %c0_i32_0 = arith.constant 0 : i32
    %c0_i32_1 = arith.constant 0 : i32
    return %c0_i32, %c0_i32_0 : i32, i32
  }
  func.func @transform_7(%arg0: i32) -> (i32, i32) {
    %c0_i32 = arith.constant 0 : i32
    %c0_i32_0 = arith.constant 0 : i32
    %c0_i32_1 = arith.constant 0 : i32
    return %c0_i32, %c0_i32_0 : i32, i32
  }
  func.func @transform_8(%arg0: i32) -> (i32, i32) {
    %c0_i32 = arith.constant 0 : i32
    %c0_i32_0 = arith.constant 0 : i32
    return %arg0, %c0_i32 : i32, i32
  }
}

</mosaic_0001>

<bundles_post_ra>
// kernel: tpu_custom_call.1
= control target key start
LH: loop header
LB: loop body
LE: loop exit
PB: predicated region body
PF: predicated region fallthrough
CT: control target
= control target key end

     0   :  { %13 = vsyncpa [#allocation3], 0  ;;  %s2768_s0 = inlined_call_operand.vmem [shape: bf16[1024,32], index: 0, kind: input, shape index: {}]   ;;  %s2769_s1 = inlined_call_operand.vmem [shape: bf16[32,32], index: 1, kind: input, shape index: {}]   ;;  %s2770_s2 = inlined_call_operand.vmem [shape: f32[1,32], index: 2, kind: input, shape index: {}]   ;;  %s2771_s3 = inlined_call_operand.vmem [shape: bf16[32,32], index: 3, kind: input, shape index: {}]   ;;  %s2772_s4 = inlined_call_operand.vmem [shape: f32[1,32], index: 4, kind: input, shape index: {}]   ;;  %s2773_s5 = inlined_call_operand.vmem [shape: f32[32,32], index: 5, kind: input, shape index: {}]   ;;  %s2774_s6 = inlined_call_operand.vmem [shape: f32[32,128], index: 6, kind: input, shape index: {}]   ;;  %s2775_s7 = inlined_call_operand.vmem [shape: f32[1,128], index: 7, kind: input, shape index: {}]   ;;  %s2776_s8 = inlined_call_operand.hbm [shape: f32[64,128], index: 8, kind: output, shape index: {}]  }
   0x1   :  { %15 = vsyncpa [#allocation3 + $0x1], 0  ;;  %s2098_s27 = smov 0   ;;  %s2100_s28 = smov 0  }
   0x2   :  { %s2102_s29 = smov 0   ;;  %s2104_s30 = smov 0  }
   0x3 LB: > { %s2119_s9 = sadd.s32 4294967295, %s2049_s30   ;;  %s1660_s10 = sadd.s32 4294967294, %s2049_s30   ;;  %s2049_s30 = sphi %s2104_s30, %s2782_s30   ;;  %s2045_s29 = sphi %s2102_s29, %s2781_s29   ;;  %s2041_s28 = sphi %s2100_s28, %s2780_s28   ;;  %s2037_s27 = sphi %s2098_s27, %s2779_s27  }
   0x4   : > { %s2123_s11 = sadd.s32 1, %s2049_s30   ;;  %s201_s12 = sadd.s32 1, %s2045_s29 }
   0x5   : > { %s198_s13 = ssub.s32 %s2049_s30, %s2123_s11  ;;  %p211_p0 = scmp.ne.s32.totalorder %s2045_s29, %s2041_s28 }
   0x6   : > { %p199_p1 = scmp.eq.s32.totalorder %s198_s13, 0  ;;  %p212_p2 = scmp.eq.s32.totalorder %s2119_s9, 3 }
   0x7   : > { %p217_p3 = scmp.ne.s32.totalorder %s2041_s28, %s2037_s27  ;;  %p218_p4 = scmp.eq.s32.totalorder %s1660_s10, 3 }
   0x8   : > { %s2134_s14 = scalar_select %p199_p1, %s2045_s29, %s201_s12  }
   0x9   : > { %p2136_p5 = por %p212_p2, %p211_p0  ;;  %p2140_p6 = por %p218_p4, %p217_p3 }
   0xa   : > { %p1663_p7 = scmp.ge.s32.totalorder %s2049_s30, 1  ;;  %p266_p8 = scmp.lt.s32.totalorder %s2049_s30, 5 }
   0xc   : > { %p267_p9 = pnand %p1663_p7, %p266_p8 }
   0xd   : > { %s1665_s19 = sshll.u32 (!%p267_p9), %s2119_s9, 5  ;;  %s297_s24 = sand.u32 (!%p267_p9), 1, %s2041_s28  }
   0xe   : > { %270 = sbr.rel (%p267_p9) target bundleno = 742 (0x2e6), region = 52  ;;  %p301_p10 = scmp.lt.s32.totalorder (!%p267_p9), %s1665_s19, 127 }
   0xf   : > { %s1664_s26 = sshll.u32 (!%p267_p9), %s297_s24, 4  ;;  %s1838_s13 = sshll.u32 (!%p267_p9), %s2119_s9, 4 }
  0x10   : > { %s299_s12 = scalar_lea.vmem (!%p267_p9), [#allocation2], %s1664_s26 }
  0x11   : > { %s1595_s20 = sshll.u32 (!%p267_p9), %s299_s12, 4  ;;  %s1596_s20 = int_to_ptr.vmem [resolvable:$true] %s1595_s20 }
  0x13   : > { %v1835_v0 = vld [vmem:[%s2769_s1 + $0x8] sm:$0xff]  ;;  %v1834_v1 = vld [vmem:[%s2769_s1] sm:$0xff]  ;;  %s2784_s19 = smov (!%p301_p10, %s1665_s19), 127  ;;  %vm440_vm0 = vcmask 261120   ;;  %v1122_v30 = vld [vmem:[%s2773_s5 + $0x18] sm:$0xff]  ;;  %vm1532_vm1 = vcmask 1041409  }
  0x14   : > { %495 = vmatpush.bf16.msra.mxu0 %v1835_v0  ;;  %1839 = vmatpush.bf16.msra.mxu3 %v1835_v0  ;;  %s1666_s22 = sshll.u32 %s2784_s19, 2  ;;  %v2206_v13 = vld [vmem:[%s2770_s2] ss:$0 sm:$0xff]  ;;  %v1837_v25 = vld [vmem:[%s2771_s3 + $0x8] sm:$0xff]  ;;  %v1121_v35 = vld [vmem:[%s2773_s5 + $0x10] sm:$0xff]  ;;  %vm1534_vm2 = vcmask 1042434   ;;  %s1594_s19 = scalar_lea.hbm %s2776_s8, %s1838_s13 }
  0x15   : > { %s2156_s25 = scalar_lea.vmem %s2768_s0, %s1666_s22  ;;  %604 = vmatpush.bf16.msra.mxu1 %v1837_v25  ;;  %v1836_v28 = vld [vmem:[%s2771_s3] sm:$0xff]  ;;  %1231 = vmatpush.msra.mxu2 %v1122_v30  ;;  %v1120_v39 = vld [vmem:[%s2773_s5 + $0x8] sm:$0xff]  ;;  %vm1536_vm3 = vcmask 1043459   ;;  %vm1538_vm4 = vcmask 1044484   ;;  %vm1540_vm5 = vcmask 1045509   ;;  %vm1542_vm6 = vcmask 1046534  }
  0x16   : > { %v1818_v2 = vld [vmem:[%s2156_s25] sm:$0xff]  ;;  %v2161_v3 = vld [vmem:[%s2156_s25 + $0x8] sm:$0xff]  ;;  %v2166_v4 = vld [vmem:[%s2156_s25 + $0x10] sm:$0xff]  ;;  %vm1544_vm7 = vcmask 1047559   ;;  %s1597_s21 = sshll.u32 %s1594_s19, 4  ;;  %s1583_s22 = scalar_lea.sflag [#allocation3], %s297_s24  ;;  %s1598_s21 = int_to_ptr.hbm [resolvable:$true] %s1597_s21 }
  0x17   : > { %v2171_v5 = vld [vmem:[%s2156_s25 + $0x18] sm:$0xff]  ;;  %v2176_v6 = vld [vmem:[%s2156_s25 + $0x20] sm:$0xff]  ;;  %v2181_v7 = vld [vmem:[%s2156_s25 + $0x28] sm:$0xff]  ;;  %1232 = vmatpush.msra.mxu2 %v1121_v35  ;;  %s2001_s23 = sshra.s32 %s1598_s21, 4  ;;  %s2002_s23 = int_to_ptr.hbm [resolvable:$true] %s2001_s23 }
  0x18   : > { %496 = vmatpush.bf16.msra.mxu0 %v1834_v1  ;;  %1840 = vmatpush.bf16.msra.mxu3 %v1834_v1  ;;  %v2186_v8 = vld [vmem:[%s2156_s25 + $0x30] sm:$0xff]  ;;  %v2191_v9 = vld [vmem:[%s2156_s25 + $0x38] sm:$0xff]  ;;  %v2196_v10 = vld [vmem:[%s2156_s25 + $0x68] sm:$0xff]  ;;  %s2003_s10 = scalar_lea.hbm %s2002_s23, 16  ;;  %p2008_p0 = scmp.lt.s32.totalorder %s2002_s23, %s2776_s8 }
  0x19   : > { %v2201_v11 = vld [vmem:[%s2156_s25 + $0x40] sm:$0xff]  ;;  %v2212_v15 = vld [vmem:[%s2156_s25 + $0x70] sm:$0xff]  ;;  %v2220_v22 = vld [vmem:[%s2156_s25 + $0x48] sm:$0xff]  ;;  %605 = vmatpush.bf16.msra.mxu1 %v1836_v28  ;;  %1233 = vmatpush.msra.mxu2 %v1120_v39  ;;  %p2004_p11 = scmp.ne.s32.totalorder %s2002_s23, %s2003_s10 }
  0x1a   : > { %v2235_v32 = vld [vmem:[%s2156_s25 + $0x78] sm:$0xff]  ;;  %v1119_v45 = vld [vmem:[%s2773_s5] sm:$0xff]  ;;  %v2253_v47 = vld [vmem:[%s2156_s25 + $0x50] sm:$0xff] }
  0x1b   : > { %1739 = vmatmul.msk.bf16.vlgmr.msra.gmra.mxu0 %vm440_vm0, %v1818_v2  ;;  %1752 = vmatmul.msk.bf16.vlgmr.msra.gmra.mxu3 %vm440_vm0, %v2196_v10  ;;  %p2005_p12 = pnand %p2004_p11, %p2136_p5 }
  0x1c   : > { %1841 = vmatpush.bf16.msrb.mxu3 %v1837_v25  ;;  %1763 = vmatmul.msk.bf16.vlgmr.msra.gmra.mxu1 %vm440_vm0, %v1818_v2 }
  0x1d   : > { %1234 = vmatpush.msra.mxu2 %v1119_v45  ;;  %p2006_p13 = pneg %p2005_p12 }
  0x20   : > { %1842 = vmatpush.bf16.msrb.mxu3 %v1836_v28 }
  0x24   : > { %1843 = vmatpush.msra.mxu3 %v1122_v30 }
  0x26   : > { %1844 = vmatpush.msra.mxu3 %v1121_v35 }
  0x28   : > { %1845 = vmatpush.msra.mxu3 %v1120_v39 }
  0x2a   : > { %1846 = vmatpush.msra.mxu3 %v1119_v45 }
  0x2b   : > { %1740 = vmatmul.msk.bf16.gmra.mxu0 %vm440_vm0, %v2161_v3  ;;  %1753 = vmatmul.msk.bf16.gmra.mxu3 %vm440_vm0, %v2212_v15 }
  0x2c   : > { %1764 = vmatmul.msk.bf16.gmra.mxu1 %vm440_vm0, %v2161_v3 }
  0x3b   : > { %1741 = vmatmul.msk.bf16.gmra.mxu0 %vm440_vm0, %v2166_v4  ;;  %1754 = vmatmul.msk.bf16.gmra.mxu3 %vm440_vm0, %v2235_v32 }
  0x3c   : > { %1765 = vmatmul.msk.bf16.gmra.mxu1 %vm440_vm0, %v2166_v4 }
  0x4b   : > { %1742 = vmatmul.msk.bf16.gmra.mxu0 %vm440_vm0, %v2171_v5  ;;  %1776 = vmatmul.msk.bf16.vlgmr.msrb.gmra.mxu3 %vm440_vm0, %v2196_v10 }
  0x4c   : > { %1766 = vmatmul.msk.bf16.gmra.mxu1 %vm440_vm0, %v2171_v5 }
  0x5b   : > { %1743 = vmatmul.msk.bf16.gmra.mxu0 %vm440_vm0, %v2176_v6  ;;  %1777 = vmatmul.msk.bf16.gmra.mxu3 %vm440_vm0, %v2212_v15  ;;  %v2293_v15 = vld [vmem:[%s2156_s25 + $0x60] sm:$0xff] }
  0x5c   : > { %1767 = vmatmul.msk.bf16.gmra.mxu1 %vm440_vm0, %v2176_v6 }
  0x6b   : > { %1744 = vmatmul.msk.bf16.gmra.mxu0 %vm440_vm0, %v2181_v7  ;;  %1778 = vmatmul.msk.bf16.gmra.mxu3 %vm440_vm0, %v2235_v32 }
  0x6c   : > { %1768 = vmatmul.msk.bf16.gmra.mxu1 %vm440_vm0, %v2181_v7 }
  0x7b   : > { %1745 = vmatmul.msk.bf16.gmra.mxu0 %vm440_vm0, %v2186_v8 }
  0x7c   : > { %1769 = vmatmul.msk.bf16.gmra.mxu1 %vm440_vm0, %v2186_v8 }
  0x8b   : > { %1746 = vmatmul.msk.bf16.gmra.mxu0 %vm440_vm0, %v2191_v9 }
  0x8c   : > { %1770 = vmatmul.msk.bf16.gmra.mxu1 %vm440_vm0, %v2191_v9 }
  0x98   : > { %v498_v12 = vpop.f32.mrf.mxu0 }
  0x99   : > { %v499_v14 = vadd.f32 %v2206_v13, %v498_v12 }
  0x9b   : > { %1747 = vmatmul.msk.bf16.gmra.mxu0 %vm440_vm0, %v2201_v11  ;;  %v687_v18 = vsel %vm440_vm0, %v499_v14, -inf }
  0x9c   : > { %1771 = vmatmul.msk.bf16.gmra.mxu1 %vm440_vm0, %v2201_v11 }
  0xa0   : > { %v500_v16 = vpop.f32.mrf.mxu0 }
  0xa1   : > { %v501_v17 = vadd.f32 %v2206_v13, %v500_v16 }
  0xa3   : > { %v688_v19 = vsel %vm440_vm0, %v501_v17, -inf }
  0xa4   : > { %v689_v20 = vmax.f32 %v687_v18, %v688_v19 }
  0xa6   : > { %v690_v21 = vrot.slane %v689_v20, 4 }
  0xa8   : > { %v691_v23 = vmax.f32 %v689_v20, %v690_v21  ;;  %v503_v24 = vpop.f32.mrf.mxu0  ;;  %v2271_v20 = vld [vmem:[%s2156_s25 + $0x58] sm:$0xff]  ;;  %s2007_s25 = scalar_lea.hbm %s2776_s8, 64 }
  0xa9   : > { %v504_v31 = vadd.f32 %v2206_v13, %v503_v24  ;;  %p2009_p1 = scmp.lt.s32.totalorder %s2007_s25, %s2003_s10 }
  0xaa   : > { %v692_v26 = vrot.slane %v691_v23, 2 }
  0xab   : > { %1748 = vmatmul.msk.bf16.gmra.mxu0 %vm440_vm0, %v2220_v22  ;;  %v696_v40 = vsel %vm440_vm0, %v504_v31, -inf  ;;  %p2010_p2 = por %p2009_p1, %p2008_p0 }
  0xac   : > { %v693_v27 = vmax.f32 %v691_v23, %v692_v26  ;;  %1772 = vmatmul.msk.bf16.gmra.mxu1 %vm440_vm0, %v2220_v22 }
  0xad   : > { %p2011_p3 = pnand %p2010_p2, %p2006_p13 }
  0xae   : > { %v694_v29 = vrot.slane %v693_v27, 1 }
  0xb0   : > { %v695_v33 = vmax.f32 %v693_v27, %v694_v29  ;;  %v505_v34 = vpop.f32.mrf.mxu0 }
  0xb1   : > { %v506_v36 = vadd.f32 %v2206_v13, %v505_v34 }
  0xb2   : > { %v831_v37 = vsub.f32 %v499_v14, %v695_v33  ;;  %v832_v38 = vsub.f32 %v501_v17, %v695_v33 }
  0xb3   : > { %v697_v41 = vsel %vm440_vm0, %v506_v36, -inf }
  0xb4   : > { %v863_v42 = vmul.f32 1.442695, %v831_v37  ;;  %v865_v43 = vmul.f32 1.442695, %v832_v38  ;;  %v698_v44 = vmax.f32 %v696_v40, %v697_v41 }
  0xb6   : > { %1891 = vpow2.f32 %v863_v42  ;;  %v699_v46 = vrot.slane %v698_v44, 4 }
  0xb7   : > { %1893 = vpow2.f32 %v865_v43 }
  0xb8   : > { %v700_v48 = vmax.f32 %v698_v44, %v699_v46  ;;  %v508_v49 = vpop.f32.mrf.mxu0 }
  0xb9   : > { %v509_v58 = vadd.f32 %v2206_v13, %v508_v49 }
  0xba   : > { %v701_v50 = vrot.slane %v700_v48, 2 }
  0xbb   : > { %1749 = vmatmul.msk.bf16.gmra.mxu0 %vm440_vm0, %v2253_v47  ;;  %v705_v2 = vsel %vm440_vm0, %v509_v58, -inf }
  0xbc   : > { %v1892_v51 = vpop.eup %1891  ;;  %v702_v52 = vmax.f32 %v700_v48, %v701_v50  ;;  %1773 = vmatmul.msk.bf16.gmra.mxu1 %vm440_vm0, %v2253_v47 }
  0xbd   : > { %v2257_v53 = vpop.eup %1893  ;;  %v927_v54 = vsel %vm440_vm0, %v1892_v51, 0.0 }
  0xbe   : > { %v928_v55 = vsel %vm440_vm0, %v2257_v53, 0.0  ;;  %v703_v56 = vrot.slane %v702_v52, 1 }
  0xbf   : > { %v929_v57 = vadd.f32 %v928_v55, %v927_v54 }
  0xc0   : > { %v704_v59 = vmax.f32 %v702_v52, %v703_v56  ;;  %v510_v60 = vpop.f32.mrf.mxu0 }
  0xc1   : > { %v930_v61 = vrot.slane %v929_v57, 4  ;;  %v511_v62 = vadd.f32 %v2206_v13, %v510_v60 }
  0xc2   : > { %v833_v63 = vsub.f32 %v504_v31, %v704_v59  ;;  %v834_v0 = vsub.f32 %v506_v36, %v704_v59 }
  0xc3   : > { %v931_v1 = vadd.f32 %v930_v61, %v929_v57  ;;  %v706_v12 = vsel %vm440_vm0, %v511_v62, -inf }
  0xc4   : > { %v867_v14 = vmul.f32 1.442695, %v833_v63  ;;  %v869_v16 = vmul.f32 1.442695, %v834_v0  ;;  %v707_v17 = vmax.f32 %v705_v2, %v706_v12 }
  0xc5   : > { %v932_v18 = vrot.slane %v931_v1, 2 }
  0xc6   : > { %1895 = vpow2.f32 %v867_v14  ;;  %v708_v19 = vrot.slane %v707_v17, 4 }
  0xc7   : > { %1897 = vpow2.f32 %v869_v16  ;;  %v933_v10 = vadd.f32 %v932_v18, %v931_v1 }
  0xc8   : > { %v709_v21 = vmax.f32 %v707_v17, %v708_v19  ;;  %v513_v23 = vpop.f32.mrf.mxu0 }
  0xc9   : > { %v934_v24 = vrot.slane %v933_v10, 1  ;;  %v514_v34 = vadd.f32 %v2206_v13, %v513_v23 }
  0xca   : > { %v710_v25 = vrot.slane %v709_v21, 2 }
  0xcb   : > { %1750 = vmatmul.msk.bf16.gmra.mxu0 %vm440_vm0, %v2271_v20  ;;  %v935_v3 = vadd.f32 %v934_v24, %v933_v10  ;;  %v714_v43 = vsel %vm440_vm0, %v514_v34, -inf }
  0xcc   : > { %v2275_v26 = vpop.eup %1895  ;;  %v711_v27 = vmax.f32 %v709_v21, %v710_v25  ;;  %1774 = vmatmul.msk.bf16.gmra.mxu1 %vm440_vm0, %v2271_v20 }
  0xcd   : > { %v2277_v28 = vpop.eup %1897  ;;  %v936_v29 = vsel %vm440_vm0, %v2275_v26, 0.0  ;;  %1899 = vrcp.f32 %v935_v3 }
  0xce   : > { %v937_v30 = vsel %vm440_vm0, %v2277_v28, 0.0  ;;  %v712_v31 = vrot.slane %v711_v27, 1 }
  0xcf   : > { %v938_v33 = vadd.f32 %v937_v30, %v936_v29 }
  0xd0   : > { %v713_v35 = vmax.f32 %v711_v27, %v712_v31  ;;  %v515_v36 = vpop.f32.mrf.mxu0 }
  0xd1   : > { %v939_v37 = vrot.slane %v938_v33, 4  ;;  %v516_v38 = vadd.f32 %v2206_v13, %v515_v36 }
  0xd2   : > { %v835_v39 = vsub.f32 %v509_v58, %v713_v35  ;;  %v836_v40 = vsub.f32 %v511_v62, %v713_v35 }
  0xd3   : > { %v1900_v41 = vpop.eup %1899  ;;  %v940_v42 = vadd.f32 %v939_v37, %v938_v33  ;;  %v715_v44 = vsel %vm440_vm0, %v516_v38, -inf }
  0xd4   : > { %v871_v45 = vmul.f32 1.442695, %v835_v39  ;;  %v873_v46 = vmul.f32 1.442695, %v836_v40  ;;  %v716_v48 = vmax.f32 %v714_v43, %v715_v44  ;;  %v1087_v49 = vmul.f32 %v1900_v41, %v1892_v51 }
  0xd5   : > { %v941_v50 = vrot.slane %v940_v42, 2  ;;  %v1088_v60 = vmul.f32 %v1900_v41, %v2257_v53 }
  0xd6   : > { %1901 = vpow2.f32 %v871_v45  ;;  %v717_v52 = vrot.slane %v716_v48, 4  ;;  %1779 = vmatmul.msk.f32.vlgmr.msra.gmra.mxu2 %vm440_vm0, %v1087_v49 }
  0xd7   : > { %1903 = vpow2.f32 %v873_v46  ;;  %v942_v54 = vadd.f32 %v941_v50, %v940_v42 }
  0xd8   : > { %v718_v4 = vmax.f32 %v716_v48, %v717_v52  ;;  %v518_v55 = vpop.f32.mrf.mxu0 }
  0xd9   : > { %v943_v56 = vrot.slane %v942_v54, 1  ;;  %v519_v2 = vadd.f32 %v2206_v13, %v518_v55 }
  0xda   : > { %v719_v57 = vrot.slane %v718_v4, 2 }
  0xdb   : > { %1751 = vmatmul.msk.bf16.gmra.mxu0 %vm440_vm0, %v2293_v15  ;;  %v944_v58 = vadd.f32 %v943_v56, %v942_v54  ;;  %v723_v21 = vsel %vm440_vm0, %v519_v2, -inf }
  0xdc   : > { %v2297_v59 = vpop.eup %1901  ;;  %v720_v51 = vmax.f32 %v718_v4, %v719_v57 }
  0xdd   : > { %v2300_v61 = vpop.eup %1903  ;;  %v945_v62 = vsel %vm440_vm0, %v2297_v59, 0.0  ;;  %1905 = vrcp.f32 %v944_v58 }
  0xde   : > { %v946_v63 = vsel %vm440_vm0, %v2300_v61, 0.0  ;;  %v721_v0 = vrot.slane %v720_v51, 1  ;;  %1780 = vmatmul.msk.f32.gmra.mxu2 %vm440_vm0, %v1088_v60 }
  0xdf   : > { %v947_v1 = vadd.f32 %v946_v63, %v945_v62 }
  0xe0   : > { %v722_v12 = vmax.f32 %v720_v51, %v721_v0  ;;  %v520_v14 = vpop.f32.mrf.mxu0 }
  0xe1   : > { %v948_v16 = vrot.slane %v947_v1, 4  ;;  %v521_v53 = vadd.f32 %v2206_v13, %v520_v14 }
  0xe2   : > { %v837_v17 = vsub.f32 %v514_v34, %v722_v12  ;;  %v838_v18 = vsub.f32 %v516_v38, %v722_v12 }
  0xe3   : > { %v1906_v19 = vpop.eup %1905  ;;  %v949_v10 = vadd.f32 %v948_v16, %v947_v1  ;;  %v724_v23 = vsel %vm440_vm0, %v521_v53, -inf }
  0xe4   : > { %v875_v24 = vmul.f32 1.442695, %v837_v17  ;;  %v877_v25 = vmul.f32 1.442695, %v838_v18  ;;  %v725_v3 = vmax.f32 %v723_v21, %v724_v23  ;;  %v1089_v27 = vmul.f32 %v1906_v19, %v2275_v26 }
  0xe5   : > { %v950_v29 = vrot.slane %v949_v10, 2  ;;  %v1090_v38 = vmul.f32 %v1906_v19, %v2277_v28 }
  0xe6   : > { %1907 = vpow2.f32 %v875_v24  ;;  %v726_v30 = vrot.slane %v725_v3, 4  ;;  %1781 = vmatmul.msk.f32.gmra.mxu2 %vm440_vm0, %v1089_v27 }
  0xe7   : > { %1909 = vpow2.f32 %v877_v25  ;;  %v951_v32 = vadd.f32 %v950_v29, %v949_v10 }
  0xe8   : > { %v727_v31 = vmax.f32 %v725_v3, %v726_v30  ;;  %v523_v5 = vpop.f32.mrf.mxu0 }
  0xe9   : > { %v952_v33 = vrot.slane %v951_v32, 1  ;;  %v524_v43 = vadd.f32 %v2206_v13, %v523_v5 }
  0xea   : > { %v728_v34 = vrot.slane %v727_v31, 2 }
  0xeb   : > { %v953_v35 = vadd.f32 %v952_v33, %v951_v32  ;;  %v732_v54 = vsel %vm440_vm0, %v524_v43, -inf }
  0xec   : > { %v1908_v36 = vpop.eup %1907  ;;  %v729_v37 = vmax.f32 %v727_v31, %v728_v34 }
  0xed   : > { %v2318_v39 = vpop.eup %1909  ;;  %v954_v26 = vsel %vm440_vm0, %v1908_v36, 0.0  ;;  %1911 = vrcp.f32 %v953_v35 }
  0xee   : > { %v955_v40 = vsel %vm440_vm0, %v2318_v39, 0.0  ;;  %v730_v41 = vrot.slane %v729_v37, 1  ;;  %1782 = vmatmul.msk.f32.gmra.mxu2 %vm440_vm0, %v1090_v38 }
  0xef   : > { %v956_v42 = vadd.f32 %v955_v40, %v954_v26 }
  0xf0   : > { %v731_v44 = vmax.f32 %v729_v37, %v730_v41  ;;  %v525_v45 = vpop.f32.mrf.mxu0 }
  0xf1   : > { %v957_v46 = vrot.slane %v956_v42, 4  ;;  %v526_v48 = vadd.f32 %v2206_v13, %v525_v45 }
  0xf2   : > { %v839_v28 = vsub.f32 %v519_v2, %v731_v44  ;;  %v840_v49 = vsub.f32 %v521_v53, %v731_v44 }
  0xf3   : > { %v1912_v50 = vpop.eup %1911  ;;  %v958_v52 = vadd.f32 %v957_v46, %v956_v42  ;;  %v733_v4 = vsel %vm440_vm0, %v526_v48, -inf }
  0xf4   : > { %v879_v55 = vmul.f32 1.442695, %v839_v28  ;;  %v881_v56 = vmul.f32 1.442695, %v840_v49  ;;  %v734_v57 = vmax.f32 %v732_v54, %v733_v4  ;;  %v1091_v58 = vmul.f32 %v1912_v50, %v2297_v59 }
  0xf5   : > { %v959_v51 = vrot.slane %v958_v52, 2  ;;  %v1092_v16 = vmul.f32 %v1912_v50, %v2300_v61 }
  0xf6   : > { %1913 = vpow2.f32 %v879_v55  ;;  %v735_v60 = vrot.slane %v734_v57, 4  ;;  %1783 = vmatmul.msk.f32.gmra.mxu2 %vm440_vm0, %v1091_v58 }
  0xf7   : > { %1915 = vpow2.f32 %v881_v56  ;;  %v960_v62 = vadd.f32 %v959_v51, %v958_v52 }
  0xf8   : > { %v736_v63 = vmax.f32 %v734_v57, %v735_v60  ;;  %v528_v6 = vpop.f32.mrf.mxu0 }
  0xf9   : > { %v961_v0 = vrot.slane %v960_v62, 1  ;;  %v529_v10 = vadd.f32 %v2206_v13, %v528_v6 }
  0xfa   : > { %v737_v1 = vrot.slane %v736_v63, 2 }
  0xfb   : > { %v962_v2 = vadd.f32 %v961_v0, %v960_v62  ;;  %v741_v30 = vsel %vm440_vm0, %v529_v10, -inf }
  0xfc   : > { %v1914_v12 = vpop.eup %1913  ;;  %v738_v14 = vmax.f32 %v736_v63, %v737_v1 }
  0xfd   : > { %v2333_v53 = vpop.eup %1915  ;;  %v963_v59 = vsel %vm440_vm0, %v1914_v12, 0.0  ;;  %1917 = vrcp.f32 %v962_v2 }
  0xfe   : > { %v964_v17 = vsel %vm440_vm0, %v2333_v53, 0.0  ;;  %v739_v18 = vrot.slane %v738_v14, 1  ;;  %1784 = vmatmul.msk.f32.gmra.mxu2 %vm440_vm0, %v1092_v16 }
  0xff   : > { %v965_v19 = vadd.f32 %v964_v17, %v963_v59 }
 0x100   : > { %v740_v21 = vmax.f32 %v738_v14, %v739_v18  ;;  %v530_v23 = vpop.f32.mrf.mxu0 }
 0x101   : > { %v966_v24 = vrot.slane %v965_v19, 4  ;;  %v531_v25 = vadd.f32 %v2206_v13, %v530_v23 }
 0x102   : > { %v841_v61 = vsub.f32 %v524_v43, %v740_v21  ;;  %v842_v3 = vsub.f32 %v526_v48, %v740_v21 }
 0x103   : > { %v1918_v27 = vpop.eup %1917  ;;  %v967_v29 = vadd.f32 %v966_v24, %v965_v19  ;;  %v742_v32 = vsel %vm440_vm0, %v531_v25, -inf }
 0x104   : > { %v883_v31 = vmul.f32 1.442695, %v841_v61  ;;  %v885_v5 = vmul.f32 1.442695, %v842_v3  ;;  %v743_v33 = vmax.f32 %v741_v30, %v742_v32  ;;  %v1093_v34 = vmul.f32 %v1918_v27, %v1908_v36 }
 0x105   : > { %v968_v35 = vrot.slane %v967_v29, 2  ;;  %v1094_v45 = vmul.f32 %v1918_v27, %v2318_v39 }
 0x106   : > { %1919 = vpow2.f32 %v883_v31  ;;  %v744_v37 = vrot.slane %v743_v33, 4  ;;  %1785 = vmatmul.msk.f32.gmra.mxu2 %vm440_vm0, %v1093_v34 }
 0x107   : > { %1921 = vpow2.f32 %v885_v5  ;;  %v969_v38 = vadd.f32 %v968_v35, %v967_v29 }
 0x108   : > { %v745_v26 = vmax.f32 %v743_v33, %v744_v37  ;;  %v533_v40 = vpop.f32.mrf.mxu0 }
 0x109   : > { %v970_v7 = vrot.slane %v969_v38, 1  ;;  %v534_v50 = vadd.f32 %v2206_v13, %v533_v40 }
 0x10a   : > { %v746_v41 = vrot.slane %v745_v26, 2 }
 0x10b   : > { %v971_v42 = vadd.f32 %v970_v7, %v969_v38  ;;  %v750_v51 = vsel %vm440_vm0, %v534_v50, -inf  ;;  %v563_v7 = vpop.f32.mrf.mxu3 }
 0x10c   : > { %v1920_v43 = vpop.eup %1919  ;;  %v747_v44 = vmax.f32 %v745_v26, %v746_v41  ;;  %v2398_v11 = vadd.f32 %v2206_v13, %v563_v7 }
 0x10d   : > { %v2347_v46 = vpop.eup %1921  ;;  %v972_v36 = vsel %vm440_vm0, %v1920_v43, 0.0  ;;  %1923 = vrcp.f32 %v971_v42 }
 0x10e   : > { %v973_v48 = vsel %vm440_vm0, %v2347_v46, 0.0  ;;  %v748_v28 = vrot.slane %v747_v44, 1  ;;  %1786 = vmatmul.msk.f32.gmra.mxu2 %vm440_vm0, %v1094_v45 }
 0x10f   : > { %v974_v49 = vadd.f32 %v973_v48, %v972_v36 }
 0x110   : > { %v749_v52 = vmax.f32 %v747_v44, %v748_v28  ;;  %v535_v54 = vpop.f32.mrf.mxu0 }
 0x111   : > { %v975_v4 = vrot.slane %v974_v49, 4  ;;  %v536_v55 = vadd.f32 %v2206_v13, %v535_v54 }
 0x112   : > { %v843_v39 = vsub.f32 %v529_v10, %v749_v52  ;;  %v844_v56 = vsub.f32 %v531_v25, %v749_v52 }
 0x113   : > { %v1924_v57 = vpop.eup %1923  ;;  %v976_v58 = vadd.f32 %v975_v4, %v974_v49  ;;  %v751_v60 = vsel %vm440_vm0, %v536_v55, -inf }
 0x114   : > { %v887_v62 = vmul.f32 1.442695, %v843_v39  ;;  %v889_v63 = vmul.f32 1.442695, %v844_v56  ;;  %v752_v6 = vmax.f32 %v750_v51, %v751_v60  ;;  %v1095_v0 = vmul.f32 %v1924_v57, %v1914_v12  ;;  %v2388_v60 = vpop.f32.mrf.mxu1 }
 0x115   : > { %v977_v1 = vrot.slane %v976_v58, 2  ;;  %v1096_v21 = vmul.f32 %v1924_v57, %v2333_v53  ;;  %v565_v57 = vpop.f32.mrf.mxu3 }
 0x116   : > { %1925 = vpow2.f32 %v887_v62  ;;  %v753_v2 = vrot.slane %v752_v6, 4  ;;  %1787 = vmatmul.msk.f32.gmra.mxu2 %vm440_vm0, %v1095_v0 }
 0x117   : > { %1927 = vpow2.f32 %v889_v63  ;;  %v978_v14 = vadd.f32 %v977_v1, %v976_v58 }
 0x118   : > { %v754_v16 = vmax.f32 %v752_v6, %v753_v2  ;;  %v538_v59 = vpop.f32.mrf.mxu0 }
 0x119   : > { %v979_v8 = vrot.slane %v978_v14, 1  ;;  %v539_v3 = vadd.f32 %v2206_v13, %v538_v59 }
 0x11a   : > { %v755_v17 = vrot.slane %v754_v16, 2 }
 0x11b   : > { %v980_v18 = vadd.f32 %v979_v8, %v978_v14  ;;  %v759_v34 = vsel %vm440_vm0, %v539_v3, -inf }
 0x11c   : > { %v2360_v19 = vpop.eup %1925  ;;  %v756_v10 = vmax.f32 %v754_v16, %v755_v17 }
 0x11d   : > { %v2363_v23 = vpop.eup %1927  ;;  %v981_v12 = vsel %vm440_vm0, %v2360_v19, 0.0  ;;  %1929 = vrcp.f32 %v980_v18 }
 0x11e   : > { %v982_v24 = vsel %vm440_vm0, %v2363_v23, 0.0  ;;  %v757_v25 = vrot.slane %v756_v10, 1  ;;  %1788 = vmatmul.msk.f32.gmra.mxu2 %vm440_vm0, %v1096_v21 }
 0x11f   : > { %v983_v61 = vadd.f32 %v982_v24, %v981_v12 }
 0x120   : > { %v758_v27 = vmax.f32 %v756_v10, %v757_v25  ;;  %v540_v29 = vpop.f32.mrf.mxu0  ;;  %v2401_v25 = vadd.f32 %v2206_v13, %v565_v57 }
 0x121   : > { %v984_v30 = vrot.slane %v983_v61, 4  ;;  %v541_v53 = vadd.f32 %v2206_v13, %v540_v29 }
 0x122   : > { %v845_v32 = vsub.f32 %v534_v50, %v758_v27  ;;  %v846_v31 = vsub.f32 %v536_v55, %v758_v27 }
 0x123   : > { %v1930_v5 = vpop.eup %1929  ;;  %v985_v33 = vadd.f32 %v984_v30, %v983_v61  ;;  %v760_v35 = vsel %vm440_vm0, %v541_v53, -inf  ;;  %v2403_v61 = vpop.f32.mrf.mxu1  ;;  %1775 = vmatmul.msk.bf16.gmra.mxu1 %vm440_vm0, %v2293_v15 }
 0x124   : > { %v891_v37 = vmul.f32 1.442695, %v845_v32  ;;  %v893_v38 = vmul.f32 1.442695, %v846_v31  ;;  %v761_v26 = vmax.f32 %v759_v34, %v760_v35  ;;  %v1097_v40 = vmul.f32 %v1930_v5, %v1920_v43 }
 0x125   : > { %v986_v41 = vrot.slane %v985_v33, 2  ;;  %v1098_v52 = vmul.f32 %v1930_v5, %v2347_v46  ;;  %v804_v32 = vsel %vm440_vm0, %v2398_v11, -inf  ;;  %v805_v31 = vsel %vm440_vm0, %v2401_v25, -inf }
 0x126   : > { %1931 = vpow2.f32 %v891_v37  ;;  %v762_v42 = vrot.slane %v761_v26, 4  ;;  %1789 = vmatmul.msk.f32.gmra.mxu2 %vm440_vm0, %v1097_v40  ;;  %v806_v40 = vmax.f32 %v804_v32, %v805_v31 }
 0x127   : > { %1933 = vpow2.f32 %v893_v38  ;;  %v987_v44 = vadd.f32 %v986_v41, %v985_v33 }
 0x128   : > { %v763_v45 = vmax.f32 %v761_v26, %v762_v42  ;;  %v543_v9 = vpop.f32.mrf.mxu0 }
 0x129   : > { %v988_v36 = vrot.slane %v987_v44, 1  ;;  %v544_v56 = vadd.f32 %v2206_v13, %v543_v9 }
 0x12a   : > { %v764_v48 = vrot.slane %v763_v45, 2 }
 0x12b   : > { %v989_v28 = vadd.f32 %v988_v36, %v987_v44  ;;  %v768_v2 = vsel %vm440_vm0, %v544_v56, -inf }
 0x12c   : > { %v2377_v49 = vpop.eup %1931  ;;  %v765_v50 = vmax.f32 %v763_v45, %v764_v48 }
 0x12d   : > { %v2380_v54 = vpop.eup %1933  ;;  %v990_v43 = vsel %vm440_vm0, %v2377_v49, 0.0  ;;  %1935 = vrcp.f32 %v989_v28 }
 0x12e   : > { %v991_v4 = vsel %vm440_vm0, %v2380_v54, 0.0  ;;  %v766_v55 = vrot.slane %v765_v50, 1  ;;  %1790 = vmatmul.msk.f32.gmra.mxu2 %vm440_vm0, %v1098_v52 }
 0x12f   : > { %v992_v39 = vadd.f32 %v991_v4, %v990_v43 }
 0x130   : > { %v767_v58 = vmax.f32 %v765_v50, %v766_v55  ;;  %v545_v51 = vpop.f32.mrf.mxu0  ;;  %v807_v50 = vrot.slane %v806_v40, 4 }
 0x131   : > { %v993_v46 = vrot.slane %v992_v39, 4  ;;  %v546_v62 = vadd.f32 %v2206_v13, %v545_v51 }
 0x132   : > { %v847_v63 = vsub.f32 %v539_v3, %v767_v58  ;;  %v848_v6 = vsub.f32 %v541_v53, %v767_v58  ;;  %v568_v3 = vpop.f32.mrf.mxu3  ;;  %v808_v51 = vmax.f32 %v806_v40, %v807_v50 }
 0x133   : > { %v1936_v0 = vpop.eup %1935  ;;  %v994_v1 = vadd.f32 %v993_v46, %v992_v39  ;;  %v769_v14 = vsel %vm440_vm0, %v546_v62, -inf }
 0x134   : > { %v895_v16 = vmul.f32 1.442695, %v847_v63  ;;  %v897_v59 = vmul.f32 1.442695, %v848_v6  ;;  %v770_v8 = vmax.f32 %v768_v2, %v769_v14  ;;  %v1099_v17 = vmul.f32 %v1936_v0, %v2360_v19 }
 0x135   : > { %v995_v18 = vrot.slane %v994_v1, 2  ;;  %v1100_v5 = vmul.f32 %v1936_v0, %v2363_v23  ;;  %v2422_v23 = vpop.f32.mrf.mxu1  ;;  %v809_v14 = vrot.slane %v808_v51, 2 }
 0x136   : > { %1937 = vpow2.f32 %v895_v16  ;;  %v771_v10 = vrot.slane %v770_v8, 4  ;;  %1791 = vmatmul.msk.f32.gmra.mxu2 %vm440_vm0, %v1099_v17 }
 0x137   : > { %1939 = vpow2.f32 %v897_v59  ;;  %v996_v21 = vadd.f32 %v995_v18, %v994_v1 }
 0x138   : > { %v772_v12 = vmax.f32 %v770_v8, %v771_v10  ;;  %v548_v24 = vpop.f32.mrf.mxu0 }
 0x139   : > { %v997_v27 = vrot.slane %v996_v21, 1  ;;  %v2420_v26 = vadd.f32 %v2206_v13, %v548_v24 }
 0x13a   : > { %v773_v19 = vrot.slane %v772_v12, 2  ;;  %v570_v43 = vpop.f32.mrf.mxu3 }
 0x13b   : > { %v998_v29 = vadd.f32 %v997_v27, %v996_v21  ;;  %v777_v28 = vsel %vm440_vm0, %v2420_v26, -inf  ;;  %v2444_v21 = vadd.f32 %v2206_v13, %v568_v3  ;;  %v810_v27 = vmax.f32 %v808_v51, %v809_v14 }
 0x13c   : > { %v2405_v30 = vpop.eup %1937  ;;  %v774_v53 = vmax.f32 %v772_v12, %v773_v19  ;;  %v2447_v12 = vadd.f32 %v2206_v13, %v570_v43 }
 0x13d   : > { %v2412_v33 = vpop.eup %1939  ;;  %v999_v34 = vsel %vm440_vm0, %v2405_v30, 0.0  ;;  %1941 = vrcp.f32 %v998_v29  ;;  %v2432_v63 = vpop.f32.mrf.mxu1 }
 0x13e   : > { %v1000_v35 = vsel %vm440_vm0, %v2412_v33, 0.0  ;;  %v775_v37 = vrot.slane %v774_v53, 1  ;;  %1792 = vmatmul.msk.f32.gmra.mxu2 %vm440_vm0, %v1100_v5 }
 0x13f   : > { %v1001_v38 = vadd.f32 %v1000_v35, %v999_v34  ;;  %v813_v34 = vsel %vm440_vm0, %v2444_v21, -inf  ;;  %v814_v35 = vsel %vm440_vm0, %v2447_v12, -inf }
 0x140   : > { %v776_v7 = vmax.f32 %v774_v53, %v775_v37  ;;  %v550_v41 = vpop.f32.mrf.mxu0  ;;  %v2466_v37 = vld [vmem:[%s2772_s4] ss:$0 sm:$0xff] }
 0x141   : > { %v1002_v42 = vrot.slane %v1001_v38, 4  ;;  %v551_v44 = vadd.f32 %v2206_v13, %v550_v41  ;;  %v811_v41 = vrot.slane %v810_v27, 1 }
 0x142   : > { %v849_v45 = vsub.f32 %v544_v56, %v776_v7  ;;  %v850_v9 = vsub.f32 %v546_v62, %v776_v7  ;;  %v573_v17 = vpop.f32.mrf.mxu3 }
 0x143   : > { %v1942_v36 = vpop.eup %1941  ;;  %v1003_v48 = vadd.f32 %v1002_v42, %v1001_v38  ;;  %v778_v52 = vsel %vm440_vm0, %v551_v44, -inf  ;;  %v2481_v51 = vadd.f32 %v2206_v13, %v573_v17 }
 0x144   : > { %v899_v4 = vmul.f32 1.442695, %v849_v45  ;;  %v901_v55 = vmul.f32 1.442695, %v850_v9  ;;  %v779_v39 = vmax.f32 %v777_v28, %v778_v52  ;;  %v1101_v57 = vmul.f32 %v1942_v36, %v2377_v49 }
 0x145   : > { %v1004_v58 = vrot.slane %v1003_v48, 2  ;;  %v1102_v49 = vmul.f32 %v1942_v36, %v2380_v54  ;;  %v2453_v53 = vpop.f32.mrf.mxu1  ;;  %v815_v9 = vmax.f32 %v813_v34, %v814_v35  ;;  %v812_v52 = vmax.f32 %v810_v27, %v811_v41 }
 0x146   : > { %1943 = vpow2.f32 %v899_v4  ;;  %v780_v56 = vrot.slane %v779_v39, 4  ;;  %1793 = vmatmul.msk.f32.gmra.mxu2 %vm440_vm0, %v1101_v57  ;;  %v618_v15 = vadd.f32 %v2466_v37, %v2453_v53 }
 0x147   : > { %1945 = vpow2.f32 %v901_v55  ;;  %v1005_v22 = vadd.f32 %v1004_v58, %v1003_v48  ;;  %v608_v48 = vadd.f32 %v2466_v37, %v2388_v60  ;;  %v816_v57 = vrot.slane %v815_v9, 4 }
 0x148   : > { %v781_v46 = vmax.f32 %v779_v39, %v780_v56  ;;  %v553_v62 = vpop.f32.mrf.mxu0  ;;  %v858_v14 = vsub.f32 %v2401_v25, %v812_v52 }
 0x149   : > { %v1006_v6 = vrot.slane %v1005_v22, 1  ;;  %v2451_v24 = vadd.f32 %v2206_v13, %v553_v62  ;;  %v857_v62 = vsub.f32 %v2398_v11, %v812_v52 }
 0x14a   : > { %v782_v0 = vrot.slane %v781_v46, 2  ;;  %v575_v50 = vpop.f32.mrf.mxu3 }
 0x14b   : > { %v1007_v1 = vadd.f32 %v1006_v6, %v1005_v22  ;;  %v2484_v60 = vadd.f32 %v2206_v13, %v575_v50 }
 0x14c   : > { %v2434_v2 = vpop.eup %1943  ;;  %v783_v16 = vmax.f32 %v781_v46, %v782_v0 }
 0x14d   : > { %v2437_v59 = vpop.eup %1945  ;;  %v1008_v8 = vsel %vm440_vm0, %v2434_v2, 0.0  ;;  %1947 = vrcp.f32 %v1007_v1  ;;  %v2478_v39 = vpop.f32.mrf.mxu1  ;;  %v823_v27 = vsel %vm440_vm0, %v2484_v60, -inf }
 0x14e   : > { %v1009_v18 = vsel %vm440_vm0, %v2437_v59, 0.0  ;;  %v784_v10 = vrot.slane %v783_v16, 1  ;;  %1794 = vmatmul.msk.f32.gmra.mxu2 %vm440_vm0, %v1102_v49  ;;  %v817_v49 = vmax.f32 %v815_v9, %v816_v57 }
 0x14f   : > { %v1010_v54 = vadd.f32 %v1009_v18, %v1008_v8 }
 0x150   : > { %v785_v19 = vmax.f32 %v783_v16, %v784_v10  ;;  %v555_v29 = vpop.f32.mrf.mxu0  ;;  %v610_v10 = vadd.f32 %v2466_v37, %v2403_v61 }
 0x151   : > { %v1011_v32 = vrot.slane %v1010_v54, 4  ;;  %v2456_v31 = vadd.f32 %v2206_v13, %v555_v29 }
 0x152   : > { %v851_v3 = vsub.f32 %v2420_v26, %v785_v19  ;;  %v852_v5 = vsub.f32 %v551_v44, %v785_v19  ;;  %v786_v26 = vsel %vm440_vm0, %v2451_v24, -inf }
 0x153   : > { %v1948_v38 = vpop.eup %1947  ;;  %v1012_v40 = vadd.f32 %v1011_v32, %v1010_v54  ;;  %v787_v7 = vsel %vm440_vm0, %v2456_v31, -inf  ;;  %v822_v54 = vsel %vm440_vm0, %v2481_v51, -inf }
 0x154   : > { %v903_v42 = vmul.f32 1.442695, %v851_v3  ;;  %v905_v44 = vmul.f32 1.442695, %v852_v5  ;;  %v788_v45 = vmax.f32 %v786_v26, %v787_v7  ;;  %v1103_v36 = vmul.f32 %v1948_v38, %v2405_v30 }
 0x155   : > { %v1013_v28 = vrot.slane %v1012_v40, 2  ;;  %v1104_v8 = vmul.f32 %v1948_v38, %v2412_v33  ;;  %v915_v33 = vmul.f32 1.442695, %v857_v62  ;;  %v2507_v32 = vpop.f32.mrf.mxu1  ;;  %v917_v3 = vmul.f32 1.442695, %v858_v14 }
 0x156   : > { %1949 = vpow2.f32 %v903_v42  ;;  %v789_v47 = vrot.slane %v788_v45, 4  ;;  %1795 = vmatmul.msk.f32.gmra.mxu2 %vm440_vm0, %v1103_v36  ;;  %v818_v5 = vrot.slane %v817_v49, 2  ;;  %v824_v26 = vmax.f32 %v822_v54, %v823_v27 }
 0x157   : > { %1951 = vpow2.f32 %v905_v44  ;;  %v1014_v55 = vadd.f32 %v1013_v28, %v1012_v40  ;;  %v613_v28 = vadd.f32 %v2466_v37, %v2422_v23  ;;  %v615_v27 = vadd.f32 %v2466_v37, %v2432_v63 }
 0x158   : > { %v790_v43 = vmax.f32 %v788_v45, %v789_v47  ;;  %v558_v4 = vpop.f32.mrf.mxu0 }
 0x159   : > { %v1236_v58 = vpop.f32.mrf.mxu2  ;;  %v1015_v22 = vrot.slane %v1014_v55, 1  ;;  %v2502_v25 = vadd.f32 %v2206_v13, %v558_v4 }
 0x15a   : > { %v791_v56 = vrot.slane %v790_v43, 2  ;;  %v1332_v30 = vmul.f32 %v1236_v58, %v608_v48  ;;  %v819_v48 = vmax.f32 %v817_v49, %v818_v5 }
 0x15b   : > { %v1016_v0 = vadd.f32 %v1015_v22, %v1014_v55  ;;  %v795_v42 = vsel %vm440_vm0, %v2502_v25, -inf }
 0x15c   : > { %v2486_v46 = vpop.eup %1949  ;;  %v792_v6 = vmax.f32 %v790_v43, %v791_v56  ;;  %v1364_v44 = vsel %vm440_vm0, %v1332_v30, 0.0  ;;  %v825_v43 = vrot.slane %v824_v26, 4  ;;  %v820_v58 = vrot.slane %v819_v48, 1 }
 0x15d   : > { %v2489_v1 = vpop.eup %1951  ;;  %v1017_v16 = vsel %vm440_vm0, %v2486_v46, 0.0  ;;  %1953 = vrcp.f32 %v1016_v0  ;;  %v2526_v57 = vpop.f32.mrf.mxu1 }
 0x15e   : > { %v1018_v17 = vsel %vm440_vm0, %v2489_v1, 0.0  ;;  %v793_v18 = vrot.slane %v792_v6, 1  ;;  %1796 = vmatmul.msk.f32.gmra.mxu2 %vm440_vm0, %v1104_v8  ;;  %1955 = vpow2.f32 %v915_v33  ;;  %v821_v8 = vmax.f32 %v819_v48, %v820_v58 }
 0x15f   : > { %v1019_v11 = vadd.f32 %v1018_v17, %v1017_v16 }
 0x160   : > { %v794_v19 = vmax.f32 %v792_v6, %v793_v18  ;;  %v560_v29 = vpop.f32.mrf.mxu0  ;;  %v826_v6 = vmax.f32 %v824_v26, %v825_v43 }
 0x161   : > { %v1020_v61 = vrot.slane %v1019_v11, 4  ;;  %v2510_v34 = vadd.f32 %v2206_v13, %v560_v29  ;;  %v1239_v35 = vpop.f32.mrf.mxu2 }
 0x162   : > { %v853_v38 = vsub.f32 %v2451_v24, %v794_v19  ;;  %v854_v40 = vsub.f32 %v2456_v31, %v794_v19  ;;  %v1333_v7 = vmul.f32 %v1239_v35, %v610_v10  ;;  %v827_v19 = vrot.slane %v826_v6, 2 }
 0x163   : > { %v1021_v41 = vadd.f32 %v1020_v61, %v1019_v11  ;;  %v796_v13 = vsel %vm440_vm0, %v2510_v34, -inf  ;;  %v1954_v45 = vpop.eup %1953 }
 0x164   : > { %v907_v9 = vmul.f32 1.442695, %v853_v38  ;;  %v909_v36 = vmul.f32 1.442695, %v854_v40  ;;  %v797_v24 = vmax.f32 %v795_v42, %v796_v13  ;;  %v1365_v31 = vsel %vm440_vm0, %v1333_v7, 0.0  ;;  %v2528_v62 = vpop.eup %1955 }
 0x165   : > { %v1366_v47 = vadd.f32 %v1365_v31, %v1364_v44  ;;  %v1105_v20 = vmul.f32 %v1954_v45, %v2434_v2  ;;  %v1022_v52 = vrot.slane %v1021_v41, 2  ;;  %v1106_v18 = vmul.f32 %v1954_v45, %v2437_v59  ;;  %v2544_v61 = vpop.f32.mrf.mxu1 }
 0x166   : > { %1957 = vpow2.f32 %v907_v9  ;;  %v798_v50 = vrot.slane %v797_v24, 4  ;;  %v1044_v59 = vsel %vm440_vm0, %v2528_v62, 0.0  ;;  %v859_v40 = vsub.f32 %v2444_v21, %v821_v8 }
 0x167   : > { %1959 = vpow2.f32 %v909_v36  ;;  %1797 = vmatmul.msk.f32.gmra.mxu2 %vm440_vm0, %v1105_v20  ;;  %v1023_v55 = vadd.f32 %v1022_v52, %v1021_v41  ;;  %v1367_v23 = vrot.slane %v1366_v47, 4  ;;  %v860_v41 = vsub.f32 %v2447_v12, %v821_v8 }
 0x168   : > { %1961 = vpow2.f32 %v917_v3  ;;  %v799_v4 = vmax.f32 %v797_v24, %v798_v50  ;;  %v828_v44 = vmax.f32 %v826_v6, %v827_v19 }
 0x169   : > { %v1242_v56 = vpop.f32.mrf.mxu2  ;;  %v1024_v2 = vrot.slane %v1023_v55, 1  ;;  %v1368_v29 = vadd.f32 %v1367_v23, %v1366_v47  ;;  %v919_v47 = vmul.f32 1.442695, %v859_v40  ;;  %v921_v12 = vmul.f32 1.442695, %v860_v41 }
 0x16a   : > { %v800_v30 = vrot.slane %v799_v4, 2  ;;  %v1334_v22 = vmul.f32 %v1242_v56, %v613_v28  ;;  %v829_v50 = vrot.slane %v828_v44, 1 }
 0x16b   : > { %v1025_v16 = vadd.f32 %v1024_v2, %v1023_v55  ;;  %v1369_v13 = vrot.slane %v1368_v29, 2 }
 0x16c   : > { %v2530_v0 = vpop.eup %1957  ;;  %v801_v14 = vmax.f32 %v799_v4, %v800_v30  ;;  %v1373_v24 = vsel %vm440_vm0, %v1334_v22, 0.0  ;;  %v830_v2 = vmax.f32 %v828_v44, %v829_v50 }
 0x16d   : > { %v2532_v49 = vpop.eup %1959  ;;  %v1026_v17 = vsel %vm440_vm0, %v2530_v0, 0.0  ;;  %1963 = vrcp.f32 %v1025_v16  ;;  %v1370_v52 = vadd.f32 %v1369_v13, %v1368_v29  ;;  %v2562_v43 = vpop.f32.mrf.mxu1 }
 0x16e   : > { %v2537_v10 = vpop.eup %1961  ;;  %v1027_v11 = vsel %vm440_vm0, %v2532_v49, 0.0  ;;  %v802_v54 = vrot.slane %v801_v14, 1 }
 0x16f   : > { %v1028_v33 = vadd.f32 %v1027_v11, %v1026_v17  ;;  %1798 = vmatmul.msk.f32.gmra.mxu2 %vm440_vm0, %v1106_v18  ;;  %v1045_v5 = vsel %vm440_vm0, %v2537_v10, 0.0  ;;  %v1371_v6 = vrot.slane %v1370_v52, 1  ;;  %v620_v11 = vadd.f32 %v2466_v37, %v2478_v39 }
 0x170   : > { %v803_v3 = vmax.f32 %v801_v14, %v802_v54  ;;  %v1046_v48 = vadd.f32 %v1045_v5, %v1044_v59 }
 0x171   : > { %v1029_v35 = vrot.slane %v1028_v33, 4  ;;  %v1245_v38 = vpop.f32.mrf.mxu2  ;;  %v1372_v59 = vadd.f32 %v1371_v6, %v1370_v52 }
 0x172   : > { %v855_v63 = vsub.f32 %v2502_v25, %v803_v3  ;;  %v856_v26 = vsub.f32 %v2510_v34, %v803_v3  ;;  %v1335_v7 = vmul.f32 %v1245_v38, %v615_v27  ;;  %v1047_v58 = vrot.slane %v1046_v48, 4 }
 0x173   : > { %v1030_v42 = vadd.f32 %v1029_v35, %v1028_v33  ;;  %v1964_v45 = vpop.eup %1963  ;;  %v862_v38 = vsub.f32 %v2484_v60, %v830_v2 }
 0x174   : > { %v911_v9 = vmul.f32 1.442695, %v855_v63  ;;  %v913_v36 = vmul.f32 1.442695, %v856_v26  ;;  %v1374_v21 = vsel %vm440_vm0, %v1335_v7, 0.0  ;;  %v1107_v25 = vmul.f32 %v1964_v45, %v2486_v46 }
 0x175   : > { %v1375_v31 = vadd.f32 %v1374_v21, %v1373_v24  ;;  %v1031_v34 = vrot.slane %v1030_v42, 2  ;;  %v1108_v8 = vmul.f32 %v1964_v45, %v2489_v1  ;;  %v1048_v17 = vadd.f32 %v1047_v58, %v1046_v48  ;;  %v2578_v19 = vpop.f32.mrf.mxu1 }
 0x176   : > { %1965 = vpow2.f32 %v911_v9  ;;  %v861_v1 = vsub.f32 %v2481_v51, %v830_v2  ;;  %v623_v24 = vadd.f32 %v2466_v37, %v2507_v32 }
 0x177   : > { %1967 = vpow2.f32 %v913_v36  ;;  %v1376_v20 = vrot.slane %v1375_v31, 4  ;;  %1799 = vmatmul.msk.f32.gmra.mxu2 %vm440_vm0, %v1107_v25  ;;  %v1032_v28 = vadd.f32 %v1031_v34, %v1030_v42  ;;  %v1049_v40 = vrot.slane %v1048_v17, 2 }
 0x178   : > { %1969 = vpow2.f32 %v919_v47  ;;  %v923_v45 = vmul.f32 1.442695, %v861_v1  ;;  %v925_v36 = vmul.f32 1.442695, %v862_v38 }
 0x179   : > { %v1377_v4 = vadd.f32 %v1376_v20, %v1375_v31  ;;  %v1248_v55 = vpop.f32.mrf.mxu2  ;;  %v1033_v46 = vrot.slane %v1032_v28, 1  ;;  %1971 = vpow2.f32 %v921_v12  ;;  %v1050_v21 = vadd.f32 %v1049_v40, %v1048_v17 }
 0x17a   : > { %v1336_v56 = vmul.f32 %v1248_v55, %v618_v15  ;;  %v625_v55 = vadd.f32 %v2466_v37, %v2526_v57 }
 0x17b   : > { %v1378_v30 = vrot.slane %v1377_v4, 2  ;;  %v1034_v22 = vadd.f32 %v1033_v46, %v1032_v28  ;;  %v1051_v20 = vrot.slane %v1050_v21, 1 }
 0x17c   : > { %v2564_v53 = vpop.eup %1965  ;;  %v1382_v51 = vsel %vm440_vm0, %v1336_v56, 0.0 }
 0x17d   : > { %v2566_v23 = vpop.eup %1967  ;;  %v1035_v14 = vsel %vm440_vm0, %v2564_v53, 0.0  ;;  %v1379_v16 = vadd.f32 %v1378_v30, %v1377_v4  ;;  %1973 = vrcp.f32 %v1034_v22  ;;  %v2595_v48 = vpop.f32.mrf.mxu1  ;;  %v1052_v46 = vadd.f32 %v1051_v20, %v1050_v21 }
 0x17e   : > { %v1036_v18 = vsel %vm440_vm0, %v2566_v23, 0.0  ;;  %v2576_v33 = vpop.eup %1969  ;;  %1975 = vpow2.f32 %v923_v45  ;;  %v630_v20 = vadd.f32 %v2466_v37, %v2562_v43  ;;  %v1511_v43 = vld [vmem:[%s2774_s6 + $0x18] sm:$0xff] }
 0x17f   : > { %v1037_v54 = vadd.f32 %v1036_v18, %v1035_v14  ;;  %v1380_v27 = vrot.slane %v1379_v16, 1  ;;  %1800 = vmatmul.msk.f32.gmra.mxu2 %vm440_vm0, %v1108_v8  ;;  %v2580_v29 = vpop.eup %1971  ;;  %v1053_v26 = vsel %vm440_vm0, %v2576_v33, 0.0  ;;  %1977 = vpow2.f32 %v925_v36  ;;  %1569 = vmatpush.msrb.mxu3 %v1511_v43 }
 0x180   : > { %v1054_v42 = vsel %vm440_vm0, %v2580_v29, 0.0 }
 0x181   : > { %v1038_v3 = vrot.slane %v1037_v54, 4  ;;  %v1381_v5 = vadd.f32 %v1380_v27, %v1379_v16  ;;  %v1251_v35 = vpop.f32.mrf.mxu2  ;;  %v1055_v31 = vadd.f32 %v1054_v42, %v1053_v26 }
 0x182   : > { %v1337_v39 = vmul.f32 %v1251_v35, %v620_v11 }
 0x183   : > { %v1974_v63 = vpop.eup %1973  ;;  %v1039_v7 = vadd.f32 %v1038_v3, %v1037_v54  ;;  %v1533_v41 = vsel %vm1532_vm1, %v1381_v5, %v1372_v59  ;;  %v1056_v28 = vrot.slane %v1055_v31, 4 }
 0x184   : > { %v1383_v44 = vsel %vm440_vm0, %v1337_v39, 0.0  ;;  %v1109_v13 = vmul.f32 %v1974_v63, %v2530_v0  ;;  %v1110_v4 = vmul.f32 %v1974_v63, %v2532_v49  ;;  %v2600_v58 = vpop.eup %1975 }
 0x185   : > { %v1040_v60 = vrot.slane %v1039_v7, 2  ;;  %v1384_v9 = vadd.f32 %v1383_v44, %v1382_v51  ;;  %v1057_v56 = vadd.f32 %v1056_v28, %v1055_v31  ;;  %v2603_v22 = vpop.eup %1977  ;;  %v637_v14 = vpop.f32.mrf.mxu1  ;;  %v1062_v49 = vsel %vm440_vm0, %v2600_v58, 0.0 }
 0x186   : > { %v1063_v57 = vsel %vm440_vm0, %v2603_v22, 0.0 }
 0x187   : > { %v1041_v25 = vadd.f32 %v1040_v60, %v1039_v7  ;;  %v1385_v34 = vrot.slane %v1384_v9, 4  ;;  %1801 = vmatmul.msk.f32.gmra.mxu2 %vm440_vm0, %v1109_v13  ;;  %v1058_v18 = vrot.slane %v1057_v56, 2  ;;  %v1064_v59 = vadd.f32 %v1063_v57, %v1062_v49  ;;  %v1508_v57 = vld [vmem:[%s2774_s6] sm:$0xff] }
 0x189   : > { %v1042_v47 = vrot.slane %v1041_v25, 1  ;;  %v1386_v15 = vadd.f32 %v1385_v34, %v1384_v9  ;;  %v1254_v12 = vpop.f32.mrf.mxu2  ;;  %v1059_v35 = vadd.f32 %v1058_v18, %v1057_v56  ;;  %v1065_v63 = vrot.slane %v1064_v59, 4 }
 0x18a   : > { %v1338_v0 = vmul.f32 %v1254_v12, %v623_v24 }
 0x18b   : > { %v1043_v50 = vadd.f32 %v1042_v47, %v1041_v25  ;;  %v1387_v52 = vrot.slane %v1386_v15, 2 }
 0x18c   : > { %v1391_v54 = vsel %vm440_vm0, %v1338_v0, 0.0 }
 0x18d   : > { %1979 = vrcp.f32 %v1043_v50  ;;  %v1388_v32 = vadd.f32 %v1387_v52, %v1386_v15  ;;  %v639_v7 = vpop.f32.mrf.mxu1  ;;  %v628_v52 = vadd.f32 %v2466_v37, %v2544_v61  ;;  %v1510_v61 = vld [vmem:[%s2774_s6 + $0x10] sm:$0xff] }
 0x18e   : > { %1981 = vrcp.f32 %v1052_v46  ;;  %v640_v56 = vadd.f32 %v2466_v37, %v639_v7  ;;  %1570 = vmatpush.msrb.mxu3 %v1510_v61 }
 0x18f   : > { %v1389_v30 = vrot.slane %v1388_v32, 1  ;;  %1802 = vmatmul.msk.f32.gmra.mxu2 %vm440_vm0, %v1110_v4 }
 0x191   : > { %v1390_v2 = vadd.f32 %v1389_v30, %v1388_v32  ;;  %v1257_v6 = vpop.f32.mrf.mxu2  ;;  %v633_v32 = vadd.f32 %v2466_v37, %v2578_v19 }
 0x192   : > { %v1339_v16 = vmul.f32 %v1257_v6, %v625_v55  ;;  %v638_v55 = vadd.f32 %v2466_v37, %v637_v14  ;;  %v1509_v6 = vld [vmem:[%s2774_s6 + $0x8] sm:$0xff] }
 0x193   : > { %v1980_v8 = vpop.eup %1979  ;;  %v1535_v17 = vsel %vm1534_vm2, %v1390_v2, %v1533_v41  ;;  %1571 = vmatpush.msrb.mxu3 %v1509_v6 }
 0x194   : > { %v1112_v11 = vmul.f32 %v1980_v8, %v2566_v23  ;;  %v1392_v27 = vsel %vm440_vm0, %v1339_v16, 0.0  ;;  %v1111_v1 = vmul.f32 %v1980_v8, %v2564_v53  ;;  %v1982_v38 = vpop.eup %1981  ;;  %v1060_v23 = vrot.slane %v1059_v35, 1 }
 0x195   : > { %v1393_v3 = vadd.f32 %v1392_v27, %v1391_v54  ;;  %v1113_v41 = vmul.f32 %v1982_v38, %v2528_v62  ;;  %v1066_v53 = vadd.f32 %v1065_v63, %v1064_v59  ;;  %v1114_v36 = vmul.f32 %v1982_v38, %v2537_v10  ;;  %v642_v24 = vpop.f32.mrf.mxu1  ;;  %1572 = vmatpush.msrb.mxu3 %v1508_v57 }
 0x196   : > { %1804 = vmatmul.msk.f32.vlgmr.msra.gmra.mxu3 %vm440_vm0, %v1112_v11  ;;  %v1061_v44 = vadd.f32 %v1060_v23, %v1059_v35 }
 0x197   : > { %v1394_v5 = vrot.slane %v1393_v3, 4  ;;  %1803 = vmatmul.msk.f32.gmra.mxu2 %vm440_vm0, %v1111_v1  ;;  %v1067_v9 = vrot.slane %v1066_v53, 2 }
 0x198   : > { %1983 = vrcp.f32 %v1061_v44 }
 0x199   : > { %v1395_v39 = vadd.f32 %v1394_v5, %v1393_v3  ;;  %v1260_v40 = vpop.f32.mrf.mxu2  ;;  %v1068_v62 = vadd.f32 %v1067_v9, %v1066_v53 }
 0x19b   : > { %v1396_v26 = vrot.slane %v1395_v39, 2  ;;  %v1069_v25 = vrot.slane %v1068_v62, 1 }
 0x19d   : > { %v1397_v42 = vadd.f32 %v1396_v26, %v1395_v39  ;;  %v1070_v47 = vadd.f32 %v1069_v25, %v1068_v62  ;;  %v644_v15 = vpop.f32.mrf.mxu1 }
 0x19e   : > { %1805 = vmatmul.msk.f32.gmra.mxu3 %vm440_vm0, %v1113_v41  ;;  %v1984_v21 = vpop.eup %1983  ;;  %v645_v7 = vadd.f32 %v2466_v37, %v644_v15 }
 0x19f   : > { %v1398_v51 = vrot.slane %v1397_v42, 1  ;;  %v1115_v34 = vmul.f32 %v1984_v21, %v2576_v33  ;;  %1985 = vrcp.f32 %v1070_v47  ;;  %v1116_v0 = vmul.f32 %v1984_v21, %v2580_v29 }
 0x1a0   : > { %v635_v33 = vadd.f32 %v2466_v37, %v2595_v48  ;;  %v1340_v48 = vmul.f32 %v1260_v40, %v628_v52  ;;  %v643_v40 = vadd.f32 %v2466_v37, %v642_v24 }
 0x1a1   : > { %v1399_v13 = vadd.f32 %v1398_v51, %v1397_v42  ;;  %v1263_v45 = vpop.f32.mrf.mxu2 }
 0x1a2   : > { %v1341_v4 = vmul.f32 %v1263_v45, %v630_v20  ;;  %v1400_v8 = vsel %vm440_vm0, %v1340_v48, 0.0 }
 0x1a3   : > { %v2619_v60 = vsel %vm1536_vm3, %v1399_v13, %v1535_v17 }
 0x1a5   : > { %v1986_v10 = vpop.eup %1985  ;;  %v2629_v50 = vpop.f32.mrf.mxu1 }
 0x1a6   : > { %1806 = vmatmul.msk.f32.gmra.mxu3 %vm440_vm0, %v1114_v36  ;;  %v1117_v29 = vmul.f32 %v1986_v10, %v2600_v58  ;;  %v1401_v58 = vsel %vm440_vm0, %v1341_v4, 0.0  ;;  %v1118_v54 = vmul.f32 %v1986_v10, %v2603_v22 }
 0x1a7   : > { %v1402_v17 = vadd.f32 %v1401_v58, %v1400_v8 }
 0x1a9   : > { %v1266_v31 = vpop.f32.mrf.mxu2  ;;  %v1403_v59 = vrot.slane %v1402_v17, 4 }
 0x1aa   : > { %v1342_v19 = vmul.f32 %v1266_v31, %v633_v32  ;;  %v2667_v32 = vpop.f32.mrf.mxu3 }
 0x1ab   : > { %v1404_v39 = vadd.f32 %v1403_v59, %v1402_v17 }
 0x1ac   : > { %v1409_v18 = vsel %vm440_vm0, %v1342_v19, 0.0 }
 0x1ad   : > { %v2653_v49 = vpop.f32.mrf.mxu1  ;;  %v1405_v22 = vrot.slane %v1404_v39, 2 }
 0x1ae   : > { %1807 = vmatmul.msk.f32.gmra.mxu3 %vm440_vm0, %v1115_v34 }
 0x1af   : > { %v1406_v13 = vadd.f32 %v1405_v22, %v1404_v39  ;;  %v648_v39 = vadd.f32 %v2466_v37, %v2629_v50 }
 0x1b1   : > { %v1269_v12 = vpop.f32.mrf.mxu2  ;;  %v1407_v25 = vrot.slane %v1406_v13, 1 }
 0x1b2   : > { %v1343_v46 = vmul.f32 %v1269_v12, %v635_v33  ;;  %v2675_v61 = vpop.f32.mrf.mxu3 }
 0x1b3   : > { %v1408_v10 = vadd.f32 %v1407_v25, %v1406_v13 }
 0x1b4   : > { %v1410_v14 = vsel %vm440_vm0, %v1343_v46, 0.0 }
 0x1b5   : > { %v1411_v27 = vadd.f32 %v1410_v14, %v1409_v18  ;;  %v652_v26 = vpop.f32.mrf.mxu1 }
 0x1b6   : > { %1808 = vmatmul.msk.f32.gmra.mxu3 %vm440_vm0, %v1116_v0 }
 0x1b7   : > { %v1412_v5 = vrot.slane %v1411_v27, 4 }
 0x1b9   : > { %v1272_v28 = vpop.f32.mrf.mxu2  ;;  %v1413_v63 = vadd.f32 %v1412_v5, %v1411_v27 }
 0x1ba   : > { %v1344_v30 = vmul.f32 %v1272_v28, %v638_v55 }
 0x1bb   : > { %v1414_v42 = vrot.slane %v1413_v63, 2 }
 0x1bc   : > { %v1418_v1 = vsel %vm440_vm0, %v1344_v30, 0.0 }
 0x1bd   : > { %v1415_v36 = vadd.f32 %v1414_v42, %v1413_v63  ;;  %v654_v31 = vpop.f32.mrf.mxu1 }
 0x1be   : > { %1809 = vmatmul.msk.f32.gmra.mxu3 %vm440_vm0, %v1117_v29  ;;  %v1539_v29 = vsel %vm1538_vm4, %v1408_v10, %v2619_v60 }
 0x1bf   : > { %v1416_v34 = vrot.slane %v1415_v36, 1 }
 0x1c1   : > { %v1275_v2 = vpop.f32.mrf.mxu2  ;;  %v1417_v20 = vadd.f32 %v1416_v34, %v1415_v36 }
 0x1c2   : > { %v1345_v16 = vmul.f32 %v1275_v2, %v640_v56  ;;  %v2677_v2 = vpop.f32.mrf.mxu3 }
 0x1c3   : > { %v1541_v55 = vsel %vm1540_vm5, %v1417_v20, %v1539_v29 }
 0x1c4   : > { %v1419_v11 = vsel %vm440_vm0, %v1345_v16, 0.0 }
 0x1c5   : > { %v1420_v3 = vadd.f32 %v1419_v11, %v1418_v1  ;;  %v657_v43 = vpop.f32.mrf.mxu1  ;;  %v655_v11 = vadd.f32 %v2466_v37, %v654_v31  ;;  %v650_v1 = vadd.f32 %v2466_v37, %v2653_v49 }
 0x1c6   : > { %1810 = vmatmul.msk.f32.gmra.mxu3 %vm440_vm0, %v1118_v54 }
 0x1c7   : > { %v1421_v38 = vrot.slane %v1420_v3, 4 }
 0x1c9   : > { %v1278_v35 = vpop.f32.mrf.mxu2  ;;  %v1422_v23 = vadd.f32 %v1421_v38, %v1420_v3  ;;  %v653_v3 = vadd.f32 %v2466_v37, %v652_v26 }
 0x1ca   : > { %v1346_v41 = vmul.f32 %v1278_v35, %v643_v40  ;;  %v2679_v14 = vpop.f32.mrf.mxu3  ;;  %v658_v35 = vadd.f32 %v2466_v37, %v657_v43 }
 0x1cb   : > { %v1423_v51 = vrot.slane %v1422_v23, 2 }
 0x1cc   : > { %v1427_v45 = vsel %vm440_vm0, %v1346_v41, 0.0 }
 0x1cd   : > { %v1424_v21 = vadd.f32 %v1423_v51, %v1422_v23  ;;  %v659_v58 = vpop.f32.mrf.mxu1 }
 0x1ce   : > { %v660_v54 = vadd.f32 %v2466_v37, %v659_v58  ;;  %v673_v58 = vadd.f32 %v2466_v37, %v2667_v32 }
 0x1cf   : > { %v1425_v15 = vrot.slane %v1424_v21, 1 }
 0x1d1   : > { %v1281_v53 = vpop.f32.mrf.mxu2  ;;  %v1426_v33 = vadd.f32 %v1425_v15, %v1424_v21 }
 0x1d2   : > { %v1347_v44 = vmul.f32 %v1281_v53, %v645_v7  ;;  %v2681_v57 = vpop.f32.mrf.mxu3 }
 0x1d3   : > { %v1543_v56 = vsel %vm1542_vm6, %v1426_v33, %v1541_v55 }
 0x1d4   : > { %v1428_v9 = vsel %vm440_vm0, %v1347_v44, 0.0 }
 0x1d5   : > { %v1429_v62 = vadd.f32 %v1428_v9, %v1427_v45  ;;  %v662_v60 = vpop.f32.mrf.mxu1 }
 0x1d6   : > { %v663_v63 = vadd.f32 %v2466_v37, %v662_v60 }
 0x1d7   : > { %v1430_v24 = vrot.slane %v1429_v62, 4 }
 0x1d9   : > { %v1431_v47 = vadd.f32 %v1430_v24, %v1429_v62  ;;  %v1284_v12 = vpop.f32.mrf.mxu2 }
 0x1da   : > { %v2685_v27 = vpop.f32.mrf.mxu3  ;;  %v1348_v53 = vmul.f32 %v1284_v12, %v648_v39 }
 0x1db   : > { %v1432_v0 = vrot.slane %v1431_v47, 2 }
 0x1dc   : > { %v1436_v34 = vsel %vm440_vm0, %v1348_v53, 0.0 }
 0x1dd   : > { %v1433_v28 = vadd.f32 %v1432_v0, %v1431_v47  ;;  %v664_v16 = vpop.f32.mrf.mxu1 }
 0x1de   : > { %v665_v59 = vadd.f32 %v2466_v37, %v664_v16 }
 0x1df   : > { %v1434_v52 = vrot.slane %v1433_v28, 1 }
 0x1e1   : > { %v1435_v4 = vadd.f32 %v1434_v52, %v1433_v28  ;;  %v1287_v46 = vpop.f32.mrf.mxu2 }
 0x1e2   : > { %v1349_v7 = vmul.f32 %v1287_v46, %v650_v1 }
 0x1e3   : > { %v1545_v48 = vsel %vm1544_vm7, %v1435_v4, %v1543_v56 }
 0x1e4   : > { %1811 = vmatmul.msk.f32.vlgmr.msrb.gmra.mxu3 %vm440_vm0, %v1545_v48  ;;  %v1437_v50 = vsel %vm440_vm0, %v1349_v7, 0.0 }
 0x1e5   : > { %v667_v17 = vpop.f32.mrf.mxu1  ;;  %v1438_v0 = vadd.f32 %v1437_v50, %v1436_v34  ;;  %v678_v50 = vadd.f32 %v2466_v37, %v2677_v2 }
 0x1e6   : > { %v668_v26 = vadd.f32 %v2466_v37, %v667_v17 }
 0x1e7   : > { %v1439_v29 = vrot.slane %v1438_v0, 4 }
 0x1e9   : > { %v1440_v48 = vadd.f32 %v1439_v29, %v1438_v0 }
 0x1ea   : > { %v1290_v19 = vpop.f32.mrf.mxu2 }
 0x1eb   : > { %v1350_v22 = vmul.f32 %v1290_v19, %v653_v3  ;;  %v1441_v17 = vrot.slane %v1440_v48, 2 }
 0x1ed   : > { %v669_v38 = vpop.f32.mrf.mxu1  ;;  %v1445_v9 = vsel %vm440_vm0, %v1350_v22, 0.0 }
 0x1ee   : > { %v670_v49 = vadd.f32 %v2466_v37, %v669_v38  ;;  %v1442_v38 = vadd.f32 %v1441_v17, %v1440_v48 }
 0x1f0   : > { %v1443_v7 = vrot.slane %v1442_v38, 1 }
 0x1f2   : > { %v1293_v30 = vpop.f32.mrf.mxu2 }
 0x1f3   : > { %v1351_v40 = vmul.f32 %v1293_v30, %v655_v11 }
 0x1f5   : > { %v1446_v51 = vsel %vm440_vm0, %v1351_v40, 0.0 }
 0x1f6   : > { %v1447_v24 = vadd.f32 %v1446_v51, %v1445_v9 }
 0x1f8   : > { %v1448_v33 = vrot.slane %v1447_v24, 4 }
 0x1fa   : > { %v1296_v6 = vpop.f32.mrf.mxu2  ;;  %v1449_v46 = vadd.f32 %v1448_v33, %v1447_v24 }
 0x1fb   : > { %v1352_v42 = vmul.f32 %v1296_v6, %v658_v35  ;;  %v675_v6 = vadd.f32 %v2466_v37, %v2675_v61 }
 0x1fc   : > { %v1450_v60 = vrot.slane %v1449_v46, 2 }
 0x1fd   : > { %v1454_v31 = vsel %vm440_vm0, %v1352_v42, 0.0 }
 0x1fe   : > { %v1451_v3 = vadd.f32 %v1450_v60, %v1449_v46 }
 0x202   : > { %v1299_v8 = vpop.f32.mrf.mxu2 }
 0x203   : > { %v1353_v23 = vmul.f32 %v1299_v8, %v660_v54 }
 0x205   : > { %v1455_v13 = vsel %vm440_vm0, %v1353_v23, 0.0 }
 0x206   : > { %v1456_v47 = vadd.f32 %v1455_v13, %v1454_v31 }
 0x208   : > { %v1457_v52 = vrot.slane %v1456_v47, 4 }
 0x20a   : > { %v1302_v18 = vpop.f32.mrf.mxu2  ;;  %v1458_v56 = vadd.f32 %v1457_v52, %v1456_v47 }
 0x20b   : > { %v1354_v44 = vmul.f32 %v1302_v18, %v663_v63  ;;  %v1452_v63 = vrot.slane %v1451_v3, 1 }
 0x20c   : > { %v1459_v16 = vrot.slane %v1458_v56, 2 }
 0x20d   : > { %v1463_v15 = vsel %vm440_vm0, %v1354_v44, 0.0  ;;  %v1444_v44 = vadd.f32 %v1443_v7, %v1442_v38 }
 0x212   : > { %v1305_v5 = vpop.f32.mrf.mxu2 }
 0x213   : > { %v1355_v41 = vmul.f32 %v1305_v5, %v665_v59  ;;  %v1460_v59 = vadd.f32 %v1459_v16, %v1458_v56 }
 0x215   : > { %v1464_v36 = vsel %vm440_vm0, %v1355_v41, 0.0  ;;  %v1461_v61 = vrot.slane %v1460_v59, 1 }
 0x216   : > { %v1465_v10 = vadd.f32 %v1464_v36, %v1463_v15 }
 0x217   : > { %v1462_v51 = vadd.f32 %v1461_v61, %v1460_v59 }
 0x218   : > { %v1466_v4 = vrot.slane %v1465_v10, 4 }
 0x219   : > { %v1311_v45 = vpop.f32.mrf.mxu3 }
 0x21a   : > { %v1308_v62 = vpop.f32.mrf.mxu2  ;;  %v1357_v21 = vmul.f32 %v1311_v45, %v670_v49  ;;  %v1467_v19 = vadd.f32 %v1466_v4, %v1465_v10  ;;  %v683_v4 = vadd.f32 %v2466_v37, %v2681_v57 }
 0x21b   : > { %v1356_v25 = vmul.f32 %v1308_v62, %v668_v26  ;;  %v1453_v26 = vadd.f32 %v1452_v63, %v1451_v3 }
 0x21c   : > { %v1473_v12 = vsel %vm440_vm0, %v1357_v21, 0.0  ;;  %v1468_v18 = vrot.slane %v1467_v19, 2  ;;  %v680_v21 = vadd.f32 %v2466_v37, %v2679_v14 }
 0x21d   : > { %v1472_v20 = vsel %vm440_vm0, %v1356_v25, 0.0  ;;  %v1546_v36 = vsel %vm1532_vm1, %v1453_v26, %v1444_v44 }
 0x21e   : > { %v1474_v28 = vadd.f32 %v1473_v12, %v1472_v20  ;;  %v1469_v32 = vadd.f32 %v1468_v18, %v1467_v19  ;;  %v1547_v31 = vsel %vm1534_vm2, %v1462_v51, %v1546_v36 }
 0x220   : > { %v1475_v43 = vrot.slane %v1474_v28, 4  ;;  %v1470_v22 = vrot.slane %v1469_v32, 1 }
 0x221   : > { %v1314_v55 = vpop.f32.mrf.mxu3 }
 0x222   : > { %v1476_v30 = vadd.f32 %v1475_v43, %v1474_v28  ;;  %v1358_v8 = vmul.f32 %v1314_v55, %v673_v58  ;;  %v1471_v13 = vadd.f32 %v1470_v22, %v1469_v32  ;;  %v685_v43 = vadd.f32 %v2466_v37, %v2685_v27  ;;  %v1890_v27 = vld [vmem:[%s2775_s7] ss:$0 sm:$0xff] }
 0x224   : > { %v1477_v54 = vrot.slane %v1476_v30, 2  ;;  %v1481_v5 = vsel %vm440_vm0, %v1358_v8, 0.0  ;;  %v1548_v47 = vsel %vm1536_vm3, %v1471_v13, %v1547_v31 }
 0x226   : > { %v1478_v40 = vadd.f32 %v1477_v54, %v1476_v30 }
 0x228   : > { %v1479_v42 = vrot.slane %v1478_v40, 1 }
 0x229   : > { %v1317_v11 = vpop.f32.mrf.mxu3 }
 0x22a   : > { %v1359_v1 = vmul.f32 %v1317_v11, %v675_v6  ;;  %v1480_v9 = vadd.f32 %v1479_v42, %v1478_v40 }
 0x22c   : > { %v1482_v35 = vsel %vm440_vm0, %v1359_v1, 0.0  ;;  %v1549_v12 = vsel %vm1538_vm4, %v1480_v9, %v1548_v47 }
 0x22d   : > { %v1483_v39 = vadd.f32 %v1482_v35, %v1481_v5 }
 0x22f   : > { %v1484_v23 = vrot.slane %v1483_v39, 4 }
 0x231   : > { %v1485_v41 = vadd.f32 %v1484_v23, %v1483_v39  ;;  %v1320_v49 = vpop.f32.mrf.mxu3 }
 0x232   : > { %v1360_v24 = vmul.f32 %v1320_v49, %v678_v50 }
 0x233   : > { %v1486_v53 = vrot.slane %v1485_v41, 2 }
 0x234   : > { %v1490_v2 = vsel %vm440_vm0, %v1360_v24, 0.0 }
 0x235   : > { %v1487_v45 = vadd.f32 %v1486_v53, %v1485_v41 }
 0x237   : > { %v1488_v62 = vrot.slane %v1487_v45, 1 }
 0x239   : > { %v1489_v25 = vadd.f32 %v1488_v62, %v1487_v45  ;;  %v1323_v34 = vpop.f32.mrf.mxu3 }
 0x23a   : > { %v1361_v15 = vmul.f32 %v1323_v34, %v680_v21 }
 0x23b   : > { %v1550_v0 = vsel %vm1540_vm5, %v1489_v25, %v1549_v12 }
 0x23c   : > { %v1491_v10 = vsel %vm440_vm0, %v1361_v15, 0.0 }
 0x23d   : > { %v1492_v20 = vadd.f32 %v1491_v10, %v1490_v2 }
 0x23f   : > { %v1493_v28 = vrot.slane %v1492_v20, 4 }
 0x241   : > { %v1494_v33 = vadd.f32 %v1493_v28, %v1492_v20  ;;  %v1326_v14 = vpop.f32.mrf.mxu3 }
 0x242   : > { %v1362_v46 = vmul.f32 %v1326_v14, %v683_v4 }
 0x243   : > { %v1495_v52 = vrot.slane %v1494_v33, 2 }
 0x244   : > { %v1499_v30 = vsel %vm440_vm0, %v1362_v46, 0.0 }
 0x245   : > { %v1496_v29 = vadd.f32 %v1495_v52, %v1494_v33 }
 0x247   : > { %v1497_v55 = vrot.slane %v1496_v29, 1 }
 0x249   : > { %v1329_v56 = vpop.f32.mrf.mxu3  ;;  %v1498_v48 = vadd.f32 %v1497_v55, %v1496_v29 }
 0x24a   : > { %v1363_v19 = vmul.f32 %v1329_v56, %v685_v43 }
 0x24b   : > { %v1551_v58 = vsel %vm1542_vm6, %v1498_v48, %v1550_v0 }
 0x24c   : > { %v1500_v60 = vsel %vm440_vm0, %v1363_v19, 0.0 }
 0x24d   : > { %v1501_v6 = vadd.f32 %v1500_v60, %v1499_v30 }
 0x24f   : > { %v1502_v16 = vrot.slane %v1501_v6, 4 }
 0x251   : > { %v1503_v8 = vadd.f32 %v1502_v16, %v1501_v6 }
 0x253   : > { %v1504_v57 = vrot.slane %v1503_v8, 2 }
 0x255   : > { %v1505_v17 = vadd.f32 %v1504_v57, %v1503_v8 }
 0x257   : > { %v1506_v18 = vrot.slane %v1505_v17, 1 }
 0x259   : > { %v1507_v11 = vadd.f32 %v1506_v18, %v1505_v17 }
 0x25b   : > { %v1552_v37 = vsel %vm1544_vm7, %v1507_v11, %v1551_v58 }
 0x25c   : > { %1812 = vmatmul.msk.f32.gmra.mxu3 %vm440_vm0, %v1552_v37 }
 0x267   : > { %v1574_v54 = vpop.f32.mrf.mxu3 }
 0x268   : > { %v1575_v1 = vadd.f32 %v1890_v27, %v1574_v54 }
 0x26a   : > { %1580 = vst [vmem:[%s299_s12] sm:$0xff] %v1575_v1 }
 0x2df   : > { %v1577_v3 = vpop.f32.mrf.mxu3 }
 0x2e0   : > { %v1578_v59 = vadd.f32 %v1890_v27, %v1577_v3 }
 0x2e2   : > { %1581 = vst [vmem:[%s299_s12 + $0x8] sm:$0xff] %v1578_v59 }
 0x2e3   : > { %2014 = shalt.err (!%p2011_p3)
}
 0x2e4   : > { %s2051_s24 = smov 128   ;;  %s2052_s12 = smov 8  }
 0x2e5   : > { %1847 = dma.vmem_to_hbm [thread:$0]  (%p2136_p5), %s1596_s20, 256, %s1598_s21, %s1583_s22, %s2051_s24, %s2051_s24, %s2052_s12  }
 0x2e6 PF: > { %p1853_p4 = scmp.ge.s32.totalorder %s2049_s30, 2  ;;  %s1612_s18 = sand.u32 1, %s2037_s27  }
 0x2e7   : > { %s1613_s19 = scalar_lea.sflag [#allocation3], %s1612_s18 }
 0x2e8   : > { %p1850_p7 = pnand %p1853_p4, %p2140_p6 }
 0x2ea   : > { %p1851_p8 = pneg %p1850_p7 }
 0x2ec   : > { %2032 = dma.done.wait (%p1851_p8), %s1613_s19, 256  }
 0x2ed   : > { %2034 = vsyncadd (%p1851_p8), %s1613_s19, 4294967040  ;;  %p18_p9 = scmp.ge.s32.totalorder %s2123_s11, 6   ;;  %s2779_s27 = smov %s2041_s28 }
 0x2ee   : > { %s2780_s28 = smov %s2045_s29  ;;  %s2781_s29 = smov %s2134_s14 }
 0x2ef   : > { %s2782_s30 = smov %s2123_s11  ;;  %20 = sbr.rel (!%p18_p9) target bundleno = 3 (0x3), region = 87 }
 0x2f4   :  { %1619 = vsyncpa [#allocation3], 1 }
 0x2f5   :  { %1621 = vsyncpa [#allocation3 + $0x1], 1 }

</bundles_post_ra>
